<compile_context>
chip_gen: v6e
topology: v6e:2x2x1
jax: 0.10.0
libtpu: 0.0.40
codegen_flags: <defaults>
</compile_context>

<pallas_src>
import functools
import math

import jax
import jax.numpy as jnp
from jax import lax
from jax.experimental import pallas as pl
from jax.experimental.pallas import tpu as pltpu


def _ceil_to(x: int, m: int) -> int:
    return ((x + m - 1) // m) * m


def _fmix32(x):
    """murmur3 32-bit finalizer (fixed shifts only) on uint32 arrays."""
    x = x ^ (x >> jnp.uint32(16))
    x = x * jnp.uint32(0x85EBCA6B)
    x = x ^ (x >> jnp.uint32(13))
    x = x * jnp.uint32(0xC2B2AE35)
    x = x ^ (x >> jnp.uint32(16))
    return x


def _hash_to_uniform(x_u32):
    """Two hash rounds -> U(0,1) float32 (strictly inside the open interval)."""
    h = _fmix32(x_u32)
    h = _fmix32(h + jnp.uint32(0x9E3779B9))
    # Top 24 bits -> (0,1); go through int32 so the int->float convert is the
    # universally-supported signed path.
    f = (h >> jnp.uint32(8)).astype(jnp.int32).astype(jnp.float32)
    return (f + 0.5) * jnp.float32(1.0 / 16777216.0)


def _denoise_kernel(seeds_ref, dose_ref, sigma_ref, bias_ref, x_ref, o_ref,
                    *, lanes_total):
    tn, tl = x_ref.shape

    # ---- per-element counters (global flat index) → independent per tile ----
    row0 = pl.program_id(0) * tn
    col0 = pl.program_id(1) * tl
    rows = lax.broadcasted_iota(jnp.int32, (tn, tl), 0) + row0
    cols = lax.broadcasted_iota(jnp.int32, (tn, tl), 1) + col0
    ctr = rows * lanes_total + cols                       # int32 (wrap is fine)

    c1 = (ctr ^ seeds_ref[0]).astype(jnp.uint32)          # stream 1
    c2 = (ctr ^ seeds_ref[1]).astype(jnp.uint32)          # stream 2

    # ---- one Box–Muller pair supplies both normals ----
    u1 = _hash_to_uniform(c1)                             # (0,1)
    u2 = _hash_to_uniform(c2)                             # (0,1)
    r = jnp.sqrt(jnp.float32(-2.0) * jnp.log(u1))
    theta = jnp.float32(2.0 * math.pi) * u2
    z_p = r * jnp.cos(theta)                              # for Poisson approx
    z_g = r * jnp.sin(theta)                              # additive Gaussian

    # ---- elementwise transform ----
    x = x_ref[...]                                        # (TN, TL) f32
    dose = dose_ref[...]                                  # (TN, 1) broadcasts
    sigma = sigma_ref[...]
    bias = bias_ref[...]

    lam = jnp.maximum(x * dose, 0.0)                      # Poisson rate
    pois = jnp.maximum(jnp.round(lam + jnp.sqrt(lam) * z_p), 0.0)
    o_ref[...] = pois + z_g * sigma + bias


def diffraction_denoise_residue_transform(
    image_batch,                       # (N, C, H, W) float32, nonnegative
    key,
    dose_range=(100.0, 300.0),
    sigma_range=(0.0, 1.0),
    bias_range=(-0.5, 0.5),
    block_rows=8,
    block_lanes=2048,
):
    n, c, h, w = image_batch.shape
    lanes = c * h * w
    x = image_batch.reshape(n, lanes).astype(jnp.float32)

    # ---- tile selection (lane-dense, VMEM-safe on v5e/v6e/v7x) ----
    tl = min(block_lanes, _ceil_to(lanes, 128))
    l_pad = _ceil_to(lanes, tl)
    if n <= block_rows:
        tn, n_pad = n, n
    else:
        tn, n_pad = block_rows, _ceil_to(n, block_rows)

    if (n_pad, l_pad) != (n, lanes):
        x = jnp.pad(x, ((0, n_pad - n), (0, l_pad - lanes)))

    # ---- per-image random scalars + kernel seeds (glue, matches torch RNG shapes) ----
    k_dose, k_sigma, k_bias, k_seed = jax.random.split(key, 4)
    dose = jax.random.randint(
        k_dose, (n, 1), int(dose_range[0]), int(dose_range[1]), dtype=jnp.int32
    ).astype(jnp.float32)
    sigma = jax.random.uniform(k_sigma, (n, 1), jnp.float32,
                               sigma_range[0], sigma_range[1])
    bias = jax.random.uniform(k_bias, (n, 1), jnp.float32,
                              bias_range[0], bias_range[1])
    seeds = jax.random.randint(k_seed, (2,), 0, 2**31 - 1, dtype=jnp.int32)

    if n_pad != n:
        pad = ((0, n_pad - n), (0, 0))
        dose = jnp.pad(dose, pad)
        sigma = jnp.pad(sigma, pad)
        bias = jnp.pad(bias, pad)

    grid = (n_pad // tn, l_pad // tl)
    total = n_pad * l_pad

    out = pl.pallas_call(
        functools.partial(_denoise_kernel, lanes_total=l_pad),
        out_shape=jax.ShapeDtypeStruct((n_pad, l_pad), jnp.float32),
        grid=grid,
        in_specs=[
            pl.BlockSpec(memory_space=pltpu.MemorySpace.SMEM),      # seeds (2,)
            pl.BlockSpec((tn, 1), lambda i, j: (i, 0)),             # dose
            pl.BlockSpec((tn, 1), lambda i, j: (i, 0)),             # sigma
            pl.BlockSpec((tn, 1), lambda i, j: (i, 0)),             # bias
            pl.BlockSpec((tn, tl), lambda i, j: (i, j)),            # image tile
        ],
        out_specs=pl.BlockSpec((tn, tl), lambda i, j: (i, j)),
        compiler_params=pltpu.CompilerParams(
            dimension_semantics=("parallel", "parallel")),
        cost_estimate=pl.CostEstimate(
            flops=40 * total,
            transcendentals=4 * total,        # log, sqrt(r), cos, sin (+sqrt(lam))
            bytes_accessed=8 * total),
    )(seeds, dose, sigma, bias, x)

    return out[:n, :lanes].reshape(n, c, h, w)


if __name__ == "__main__":
    key = jax.random.PRNGKey(0)
    k_img, k_fwd = jax.random.split(key)

    # Nonnegative image (Poisson rates must be >= 0), NCHW.
    x = jax.random.uniform(k_img, (2, 4, 16, 16), dtype=jnp.float32)

    out = diffraction_denoise_residue_transform(
        x, k_fwd,
        dose_range=(100.0, 300.0),
        sigma_range=(0.0, 1.0),
        bias_range=(-0.5, 0.5),
    )
    out = jax.block_until_ready(out)

    assert out.shape == x.shape and out.dtype == jnp.float32
    assert bool(jnp.all(jnp.isfinite(out)))
    # Mean of Poisson(x*dose) ≈ mean(x)*mean(dose); very loose sanity band.
    ratio = float(jnp.mean(out)) / (float(jnp.mean(x)) * 200.0)
    assert 0.3 < ratio < 3.0, f"unexpected output scale (ratio={ratio})"
    print("KERNEL_OK")
</pallas_src>

<mosaic_0001>
module attributes {stable_mosaic.version = 11 : i64} {
  func.func @_denoise_kernel(%arg0: i32, %arg1: i32, %arg2: memref<2xi32, #tpu.memory_space<smem>>, %arg3: memref<2x1xf32, #tpu.memory_space<vmem>>, %arg4: memref<2x1xf32, #tpu.memory_space<vmem>>, %arg5: memref<2x1xf32, #tpu.memory_space<vmem>>, %arg6: memref<2x1024xf32, #tpu.memory_space<vmem>>, %arg7: memref<2x1024xf32, #tpu.memory_space<vmem>>) attributes {dimension_semantics = [#tpu.dimension_semantics<parallel>, #tpu.dimension_semantics<parallel>], iteration_bounds = array<i64: 1, 1>, scalar_prefetch = 0 : i64, scratch_operands = 0 : i64, tpu.core_type = #tpu.core_type<tc>, window_params = [{transform_indices = @transform_0, window_bounds = array<i64: 2>}, {transform_indices = @transform_1, window_bounds = array<i64: 2, 1>}, {transform_indices = @transform_2, window_bounds = array<i64: 2, 1>}, {transform_indices = @transform_3, window_bounds = array<i64: 2, 1>}, {transform_indices = @transform_4, window_bounds = array<i64: 2, 1024>}, {transform_indices = @transform_5, window_bounds = array<i64: 2, 1024>}]} {
    %c2_i32 = arith.constant 2 : i32
    %0 = arith.muli %arg0, %c2_i32 : i32
    %c1024_i32 = arith.constant 1024 : i32
    %1 = arith.muli %arg1, %c1024_i32 : i32
    %2 = tpu.iota {dimensions = array<i32: 0>} : vector<2x1024xi32>
    %3 = vector.broadcast %0 : i32 to vector<2x1024xi32>
    %4 = arith.addi %2, %3 : vector<2x1024xi32>
    %5 = tpu.iota {dimensions = array<i32: 1>} : vector<2x1024xi32>
    %6 = vector.broadcast %1 : i32 to vector<2x1024xi32>
    %7 = arith.addi %5, %6 : vector<2x1024xi32>
    %c1024_i32_0 = arith.constant 1024 : i32
    %8 = vector.broadcast %c1024_i32_0 : i32 to vector<2x1024xi32>
    %9 = arith.muli %4, %8 : vector<2x1024xi32>
    %10 = arith.addi %9, %7 : vector<2x1024xi32>
    %c0 = arith.constant 0 : index
    %11 = memref.load %arg2[%c0] : memref<2xi32, #tpu.memory_space<smem>>
    %12 = vector.broadcast %11 : i32 to vector<2x1024xi32>
    %13 = arith.xori %10, %12 : vector<2x1024xi32>
    %c1 = arith.constant 1 : index
    %14 = memref.load %arg2[%c1] : memref<2xi32, #tpu.memory_space<smem>>
    %15 = vector.broadcast %14 : i32 to vector<2x1024xi32>
    %16 = arith.xori %10, %15 : vector<2x1024xi32>
    %c16_i32 = arith.constant 16 : i32
    %17 = vector.broadcast %c16_i32 : i32 to vector<2x1024xi32>
    %18 = arith.shrui %13, %17 : vector<2x1024xi32>
    %19 = arith.xori %13, %18 : vector<2x1024xi32>
    %c-2048144789_i32 = arith.constant -2048144789 : i32
    %20 = vector.broadcast %c-2048144789_i32 : i32 to vector<2x1024xi32>
    %21 = arith.muli %19, %20 : vector<2x1024xi32>
    %c13_i32 = arith.constant 13 : i32
    %22 = vector.broadcast %c13_i32 : i32 to vector<2x1024xi32>
    %23 = arith.shrui %21, %22 : vector<2x1024xi32>
    %24 = arith.xori %21, %23 : vector<2x1024xi32>
    %c-1028477387_i32 = arith.constant -1028477387 : i32
    %25 = vector.broadcast %c-1028477387_i32 : i32 to vector<2x1024xi32>
    %26 = arith.muli %24, %25 : vector<2x1024xi32>
    %c16_i32_1 = arith.constant 16 : i32
    %27 = vector.broadcast %c16_i32_1 : i32 to vector<2x1024xi32>
    %28 = arith.shrui %26, %27 : vector<2x1024xi32>
    %29 = arith.xori %26, %28 : vector<2x1024xi32>
    %c-1640531527_i32 = arith.constant -1640531527 : i32
    %30 = vector.broadcast %c-1640531527_i32 : i32 to vector<2x1024xi32>
    %31 = arith.addi %29, %30 : vector<2x1024xi32>
    %c16_i32_2 = arith.constant 16 : i32
    %32 = vector.broadcast %c16_i32_2 : i32 to vector<2x1024xi32>
    %33 = arith.shrui %31, %32 : vector<2x1024xi32>
    %34 = arith.xori %31, %33 : vector<2x1024xi32>
    %c-2048144789_i32_3 = arith.constant -2048144789 : i32
    %35 = vector.broadcast %c-2048144789_i32_3 : i32 to vector<2x1024xi32>
    %36 = arith.muli %34, %35 : vector<2x1024xi32>
    %c13_i32_4 = arith.constant 13 : i32
    %37 = vector.broadcast %c13_i32_4 : i32 to vector<2x1024xi32>
    %38 = arith.shrui %36, %37 : vector<2x1024xi32>
    %39 = arith.xori %36, %38 : vector<2x1024xi32>
    %c-1028477387_i32_5 = arith.constant -1028477387 : i32
    %40 = vector.broadcast %c-1028477387_i32_5 : i32 to vector<2x1024xi32>
    %41 = arith.muli %39, %40 : vector<2x1024xi32>
    %c16_i32_6 = arith.constant 16 : i32
    %42 = vector.broadcast %c16_i32_6 : i32 to vector<2x1024xi32>
    %43 = arith.shrui %41, %42 : vector<2x1024xi32>
    %44 = arith.xori %41, %43 : vector<2x1024xi32>
    %c8_i32 = arith.constant 8 : i32
    %45 = vector.broadcast %c8_i32 : i32 to vector<2x1024xi32>
    %46 = arith.shrui %44, %45 : vector<2x1024xi32>
    %47 = arith.sitofp %46 : vector<2x1024xi32> to vector<2x1024xf32>
    %cst = arith.constant 5.000000e-01 : f32
    %48 = vector.broadcast %cst : f32 to vector<2x1024xf32>
    %49 = arith.addf %47, %48 : vector<2x1024xf32>
    %cst_7 = arith.constant 5.96046448E-8 : f32
    %50 = vector.broadcast %cst_7 : f32 to vector<2x1024xf32>
    %51 = arith.mulf %49, %50 : vector<2x1024xf32>
    %c16_i32_8 = arith.constant 16 : i32
    %52 = vector.broadcast %c16_i32_8 : i32 to vector<2x1024xi32>
    %53 = arith.shrui %16, %52 : vector<2x1024xi32>
    %54 = arith.xori %16, %53 : vector<2x1024xi32>
    %c-2048144789_i32_9 = arith.constant -2048144789 : i32
    %55 = vector.broadcast %c-2048144789_i32_9 : i32 to vector<2x1024xi32>
    %56 = arith.muli %54, %55 : vector<2x1024xi32>
    %c13_i32_10 = arith.constant 13 : i32
    %57 = vector.broadcast %c13_i32_10 : i32 to vector<2x1024xi32>
    %58 = arith.shrui %56, %57 : vector<2x1024xi32>
    %59 = arith.xori %56, %58 : vector<2x1024xi32>
    %c-1028477387_i32_11 = arith.constant -1028477387 : i32
    %60 = vector.broadcast %c-1028477387_i32_11 : i32 to vector<2x1024xi32>
    %61 = arith.muli %59, %60 : vector<2x1024xi32>
    %c16_i32_12 = arith.constant 16 : i32
    %62 = vector.broadcast %c16_i32_12 : i32 to vector<2x1024xi32>
    %63 = arith.shrui %61, %62 : vector<2x1024xi32>
    %64 = arith.xori %61, %63 : vector<2x1024xi32>
    %c-1640531527_i32_13 = arith.constant -1640531527 : i32
    %65 = vector.broadcast %c-1640531527_i32_13 : i32 to vector<2x1024xi32>
    %66 = arith.addi %64, %65 : vector<2x1024xi32>
    %c16_i32_14 = arith.constant 16 : i32
    %67 = vector.broadcast %c16_i32_14 : i32 to vector<2x1024xi32>
    %68 = arith.shrui %66, %67 : vector<2x1024xi32>
    %69 = arith.xori %66, %68 : vector<2x1024xi32>
    %c-2048144789_i32_15 = arith.constant -2048144789 : i32
    %70 = vector.broadcast %c-2048144789_i32_15 : i32 to vector<2x1024xi32>
    %71 = arith.muli %69, %70 : vector<2x1024xi32>
    %c13_i32_16 = arith.constant 13 : i32
    %72 = vector.broadcast %c13_i32_16 : i32 to vector<2x1024xi32>
    %73 = arith.shrui %71, %72 : vector<2x1024xi32>
    %74 = arith.xori %71, %73 : vector<2x1024xi32>
    %c-1028477387_i32_17 = arith.constant -1028477387 : i32
    %75 = vector.broadcast %c-1028477387_i32_17 : i32 to vector<2x1024xi32>
    %76 = arith.muli %74, %75 : vector<2x1024xi32>
    %c16_i32_18 = arith.constant 16 : i32
    %77 = vector.broadcast %c16_i32_18 : i32 to vector<2x1024xi32>
    %78 = arith.shrui %76, %77 : vector<2x1024xi32>
    %79 = arith.xori %76, %78 : vector<2x1024xi32>
    %c8_i32_19 = arith.constant 8 : i32
    %80 = vector.broadcast %c8_i32_19 : i32 to vector<2x1024xi32>
    %81 = arith.shrui %79, %80 : vector<2x1024xi32>
    %82 = arith.sitofp %81 : vector<2x1024xi32> to vector<2x1024xf32>
    %cst_20 = arith.constant 5.000000e-01 : f32
    %83 = vector.broadcast %cst_20 : f32 to vector<2x1024xf32>
    %84 = arith.addf %82, %83 : vector<2x1024xf32>
    %cst_21 = arith.constant 5.96046448E-8 : f32
    %85 = vector.broadcast %cst_21 : f32 to vector<2x1024xf32>
    %86 = arith.mulf %84, %85 : vector<2x1024xf32>
    %87 = math.log %51 : vector<2x1024xf32>
    %cst_22 = arith.constant -2.000000e+00 : f32
    %88 = vector.broadcast %cst_22 : f32 to vector<2x1024xf32>
    %89 = arith.mulf %88, %87 : vector<2x1024xf32>
    %90 = math.sqrt %89 : vector<2x1024xf32>
    %cst_23 = arith.constant 6.28318548 : f32
    %91 = vector.broadcast %cst_23 : f32 to vector<2x1024xf32>
    %92 = arith.mulf %91, %86 : vector<2x1024xf32>
    %93 = math.cos %92 : vector<2x1024xf32>
    %94 = arith.mulf %90, %93 : vector<2x1024xf32>
    %95 = math.sin %92 : vector<2x1024xf32>
    %96 = arith.mulf %90, %95 : vector<2x1024xf32>
    %c0_24 = arith.constant 0 : index
    %c0_25 = arith.constant 0 : index
    %97 = vector.load %arg6[%c0_24, %c0_25] : memref<2x1024xf32, #tpu.memory_space<vmem>>, vector<2x1024xf32>
    %c0_26 = arith.constant 0 : index
    %c0_27 = arith.constant 0 : index
    %98 = vector.load %arg3[%c0_26, %c0_27] : memref<2x1xf32, #tpu.memory_space<vmem>>, vector<2x1xf32>
    %c0_28 = arith.constant 0 : index
    %c0_29 = arith.constant 0 : index
    %99 = vector.load %arg4[%c0_28, %c0_29] : memref<2x1xf32, #tpu.memory_space<vmem>>, vector<2x1xf32>
    %c0_30 = arith.constant 0 : index
    %c0_31 = arith.constant 0 : index
    %100 = vector.load %arg5[%c0_30, %c0_31] : memref<2x1xf32, #tpu.memory_space<vmem>>, vector<2x1xf32>
    %101 = vector.broadcast %98 : vector<2x1xf32> to vector<2x1024xf32>
    %102 = arith.mulf %97, %101 : vector<2x1024xf32>
    %cst_32 = arith.constant 0.000000e+00 : f32
    %103 = vector.broadcast %cst_32 : f32 to vector<2x1024xf32>
    %104 = arith.maximumf %102, %103 : vector<2x1024xf32>
    %105 = math.sqrt %104 : vector<2x1024xf32>
    %106 = arith.mulf %105, %94 : vector<2x1024xf32>
    %107 = arith.addf %104, %106 : vector<2x1024xf32>
    %108 = math.roundeven %107 : vector<2x1024xf32>
    %cst_33 = arith.constant 0.000000e+00 : f32
    %109 = vector.broadcast %cst_33 : f32 to vector<2x1024xf32>
    %110 = arith.maximumf %108, %109 : vector<2x1024xf32>
    %111 = vector.broadcast %99 : vector<2x1xf32> to vector<2x1024xf32>
    %112 = arith.mulf %96, %111 : vector<2x1024xf32>
    %113 = arith.addf %110, %112 : vector<2x1024xf32>
    %114 = vector.broadcast %100 : vector<2x1xf32> to vector<2x1024xf32>
    %115 = arith.addf %113, %114 : vector<2x1024xf32>
    %c0_34 = arith.constant 0 : index
    %c0_35 = arith.constant 0 : index
    %116 = vector.load %arg7[%c0_34, %c0_35] : memref<2x1024xf32, #tpu.memory_space<vmem>>, vector<2x1024xf32>
    tpu.vector_store %arg7[%c0_34, %c0_35], %115 {strides = array<i32>} : memref<2x1024xf32, #tpu.memory_space<vmem>>, vector<2x1024xf32>,
    return
  }
  func.func @transform_0(%arg0: i32, %arg1: i32) -> i32 {
    %c0_i32 = arith.constant 0 : i32
    %c0_i32_0 = arith.constant 0 : i32
    return %c0_i32 : i32
  }
  func.func @transform_1(%arg0: i32, %arg1: i32) -> (i32, i32) {
    %c0_i32 = arith.constant 0 : i32
    %c0_i32_0 = arith.constant 0 : i32
    return %arg0, %c0_i32 : i32, i32
  }
  func.func @transform_2(%arg0: i32, %arg1: i32) -> (i32, i32) {
    %c0_i32 = arith.constant 0 : i32
    %c0_i32_0 = arith.constant 0 : i32
    return %arg0, %c0_i32 : i32, i32
  }
  func.func @transform_3(%arg0: i32, %arg1: i32) -> (i32, i32) {
    %c0_i32 = arith.constant 0 : i32
    %c0_i32_0 = arith.constant 0 : i32
    return %arg0, %c0_i32 : i32, i32
  }
  func.func @transform_4(%arg0: i32, %arg1: i32) -> (i32, i32) {
    %c0_i32 = arith.constant 0 : i32
    return %arg0, %arg1 : i32, i32
  }
  func.func @transform_5(%arg0: i32, %arg1: i32) -> (i32, i32) {
    %c0_i32 = arith.constant 0 : i32
    return %arg0, %arg1 : i32, i32
  }
}

</mosaic_0001>

<bundles_post_ra>
// kernel: tpu_custom_call.1
= control target key start
LH: loop header
LB: loop body
LE: loop exit
PB: predicated region body
PF: predicated region fallthrough
CT: control target
= control target key end

     0   :  { %10 = vsyncpa [#allocation4], 0  ;;  %s3865_s0 = inlined_call_operand.hbm [shape: s32[2], index: 0, kind: input, shape index: {}]   ;;  %s3866_s1 = inlined_call_operand.vmem [shape: f32[2,1], index: 1, kind: input, shape index: {}]   ;;  %s3867_s2 = inlined_call_operand.vmem [shape: f32[2,1], index: 2, kind: input, shape index: {}]   ;;  %s3868_s3 = inlined_call_operand.vmem [shape: f32[2,1], index: 3, kind: input, shape index: {}]   ;;  %s3869_s4 = inlined_call_operand.vmem [shape: f32[2,1024], index: 4, kind: input, shape index: {}]   ;;  %s3870_s5 = inlined_call_operand.hbm [shape: f32[2,1024], index: 5, kind: output, shape index: {}]  }
   0x1   :  { %11 = vsyncpa [#allocation3], 0  ;;  %s2584_s18 = smov [#allocation2]  }
   0x2   :  { %19 = dma.hbm_to_smem %s3865_s0, 16, %s2584_s18, [#allocation4]  }
   0x3   :  { %2580 = dma.done.wait [#allocation4], 16  }
   0x4   :  { %2581 = vsyncadd [#allocation4], 4294967280 }
   0x5   :  { %31 = sfence }
   0x6   :  { %v2183_v0 = vld [vmem:[%s3866_s1] sm:$0x3]  ;;  %v2585_v1 = vmov 0   ;;  %v34_v4 = vlaneseq  ;;  %s65_s0 = sld [smem:[#allocation2]] }
   0x7   :  { %2482 = vset.pattern.permute.xlu0 %v2585_v1  ;;  %2483 = vset.pattern.permute.xlu1 %v2585_v1  ;;  %v2185_v2 = vld [vmem:[%s3868_s3] sm:$0x3]  ;;  %s2358_s1 = sld [smem:[#allocation2 + $0x1]] }
   0x8   :  { %2188 = vperm.xlu0 %2482, %v2183_v0   ;;  %2329 = vperm.xlu1 %2483, %v2185_v2   ;;  %v2184_v3 = vld [vmem:[%s3867_s2] sm:$0x3]  ;;  %v2637_v5 = vshrl.u32 %v34_v4, 7  ;;  %v39_v6 = vand.u32 127, %v34_v4 }
   0xa   :  { %3898 = vst [vmem:[#allocation8_spill] sm:$0xff] %v2637_v5  ;;  %v40_v7 = vadd.s32 128, %v39_v6  ;;  %v56_v8 = vmul.u32 1024, %v2637_v5  ;;  %v41_v9 = vadd.s32 256, %v39_v6  ;;  %v42_v10 = vadd.s32 384, %v39_v6 }
   0xb   :  { %v43_v11 = vadd.s32 512, %v39_v6  ;;  %v44_v12 = vadd.s32 640, %v39_v6  ;;  %v45_v14 = vadd.s32 768, %v39_v6  ;;  %v46_v15 = vadd.s32 896, %v39_v6 }
   0xc   :  { %2270 = vperm.xlu0 %2482, %v2184_v3   ;;  %v66_v13 = vstv %s65_s0  ;;  %v57_v16 = vadd.s32 %v56_v8, %v39_v6  ;;  %v58_v17 = vadd.s32 %v56_v8, %v40_v7  ;;  %v59_v18 = vadd.s32 %v56_v8, %v41_v9 }
   0xd   :  { %v2640_v19 = vadd.s32 %v56_v8, %v42_v10  ;;  %v2642_v20 = vadd.s32 %v56_v8, %v43_v11  ;;  %v2644_v21 = vadd.s32 %v56_v8, %v44_v12  ;;  %v2647_v26 = vadd.s32 %v56_v8, %v45_v14 }
   0xe   :  { %v67_v22 = vxor.u32 %v66_v13, %v57_v16  ;;  %v68_v23 = vxor.u32 %v66_v13, %v58_v17  ;;  %v69_v24 = vxor.u32 %v66_v13, %v59_v18  ;;  %v2649_v27 = vadd.s32 %v56_v8, %v46_v15 }
   0xf   :  { %v70_v25 = vxor.u32 %v66_v13, %v2640_v19  ;;  %v71_v28 = vxor.u32 %v66_v13, %v2642_v20  ;;  %v72_v29 = vxor.u32 %v66_v13, %v2644_v21  ;;  %v73_v30 = vxor.u32 %v66_v13, %v2647_v26 }
  0x10   :  { %v74_v31 = vxor.u32 %v66_v13, %v2649_v27  ;;  %v85_v32 = vshrl.u32 %v67_v22, 16  ;;  %v86_v33 = vshrl.u32 %v68_v23, 16  ;;  %v87_v34 = vshrl.u32 %v69_v24, 16 }
  0x11   :  { %v88_v35 = vshrl.u32 %v70_v25, 16  ;;  %v89_v36 = vshrl.u32 %v71_v28, 16  ;;  %v90_v37 = vshrl.u32 %v72_v29, 16  ;;  %v91_v38 = vshrl.u32 %v73_v30, 16 }
  0x12   :  { %v92_v39 = vshrl.u32 %v74_v31, 16  ;;  %v93_v40 = vxor.u32 %v85_v32, %v67_v22  ;;  %v94_v41 = vxor.u32 %v86_v33, %v68_v23  ;;  %v95_v42 = vxor.u32 %v87_v34, %v69_v24 }
  0x13   :  { %v96_v43 = vxor.u32 %v88_v35, %v70_v25  ;;  %v97_v44 = vxor.u32 %v89_v36, %v71_v28  ;;  %v98_v45 = vxor.u32 %v90_v37, %v72_v29  ;;  %v99_v46 = vxor.u32 %v91_v38, %v73_v30 }
  0x14   :  { %v100_v47 = vxor.u32 %v92_v39, %v74_v31  ;;  %v101_v48 = vmul.u32 2246822507, %v93_v40  ;;  %v102_v49 = vmul.u32 2246822507, %v94_v41  ;;  %v76_v62 = vstv %s2358_s1 }
  0x15   :  { %v103_v50 = vmul.u32 2246822507, %v95_v42  ;;  %v104_v51 = vmul.u32 2246822507, %v96_v43  ;;  %v77_v8 = vxor.u32 %v76_v62, %v57_v16  ;;  %v78_v13 = vxor.u32 %v76_v62, %v58_v17 }
  0x16   :  { %v105_v52 = vmul.u32 2246822507, %v97_v44  ;;  %v106_v53 = vmul.u32 2246822507, %v98_v45  ;;  %v109_v56 = vshrl.u32 %v101_v48, 13  ;;  %v110_v57 = vshrl.u32 %v102_v49, 13 }
  0x17   :  { %v107_v54 = vmul.u32 2246822507, %v99_v46  ;;  %v108_v55 = vmul.u32 2246822507, %v100_v47  ;;  %v111_v58 = vshrl.u32 %v103_v50, 13  ;;  %v112_v59 = vshrl.u32 %v104_v51, 13 }
  0x18   :  { %v113_v60 = vshrl.u32 %v105_v52, 13  ;;  %v114_v61 = vshrl.u32 %v106_v53, 13  ;;  %v117_v1 = vxor.u32 %v109_v56, %v101_v48  ;;  %v118_v2 = vxor.u32 %v110_v57, %v102_v49 }
  0x19   :  { %v115_v63 = vshrl.u32 %v107_v54, 13  ;;  %v116_v0 = vshrl.u32 %v108_v55, 13  ;;  %v119_v3 = vxor.u32 %v111_v58, %v103_v50  ;;  %v120_v4 = vxor.u32 %v112_v59, %v104_v51 }
  0x1a   :  { %v121_v6 = vxor.u32 %v113_v60, %v105_v52  ;;  %v122_v7 = vxor.u32 %v114_v61, %v106_v53  ;;  %v125_v11 = vmul.u32 3266489909, %v117_v1  ;;  %v126_v12 = vmul.u32 3266489909, %v118_v2 }
  0x1b   :  { %v123_v9 = vxor.u32 %v115_v63, %v107_v54  ;;  %v2655_v10 = vxor.u32 %v116_v0, %v108_v55  ;;  %v79_v14 = vxor.u32 %v76_v62, %v59_v18  ;;  %v127_v15 = vmul.u32 3266489909, %v119_v3 }
  0x1c   :  { %v128_v22 = vmul.u32 3266489909, %v120_v4  ;;  %v129_v23 = vmul.u32 3266489909, %v121_v6  ;;  %v80_v25 = vxor.u32 %v76_v62, %v2640_v19  ;;  %v133_v30 = vshrl.u32 %v125_v11, 16 }
  0x1d   :  { %v130_v24 = vmul.u32 3266489909, %v122_v7  ;;  %v131_v28 = vmul.u32 3266489909, %v123_v9  ;;  %v134_v31 = vshrl.u32 %v126_v12, 16  ;;  %v135_v32 = vshrl.u32 %v127_v15, 16 }
  0x1e   :  { %v132_v29 = vmul.u32 3266489909, %v2655_v10  ;;  %v253_v16 = vshrl.u32 %v77_v8, 16  ;;  %v254_v33 = vshrl.u32 %v78_v13, 16  ;;  %v255_v34 = vshrl.u32 %v79_v14, 16 }
  0x1f   :  { %v81_v35 = vxor.u32 %v76_v62, %v2642_v20  ;;  %v136_v36 = vshrl.u32 %v128_v22, 16  ;;  %v137_v17 = vshrl.u32 %v129_v23, 16  ;;  %v138_v18 = vshrl.u32 %v130_v24, 16 }
  0x20   :  { %v82_v37 = vxor.u32 %v76_v62, %v2644_v21  ;;  %v83_v38 = vxor.u32 %v76_v62, %v2647_v26  ;;  %v84_v19 = vxor.u32 %v76_v62, %v2649_v27  ;;  %v256_v39 = vshrl.u32 %v80_v25, 16 }
  0x21   :  { %v139_v40 = vshrl.u32 %v131_v28, 16  ;;  %v140_v41 = vshrl.u32 %v132_v29, 16  ;;  %v141_v42 = vxor.u32 %v133_v30, %v125_v11  ;;  %v142_v43 = vxor.u32 %v134_v31, %v126_v12 }
  0x22   :  { %v143_v44 = vxor.u32 %v135_v32, %v127_v15  ;;  %v261_v45 = vxor.u32 %v253_v16, %v77_v8  ;;  %v262_v46 = vxor.u32 %v254_v33, %v78_v13  ;;  %v263_v47 = vxor.u32 %v255_v34, %v79_v14 }
  0x23   :  { %v144_v48 = vxor.u32 %v136_v36, %v128_v22  ;;  %v145_v20 = vxor.u32 %v137_v17, %v129_v23  ;;  %v146_v49 = vxor.u32 %v138_v18, %v130_v24  ;;  %v257_v50 = vshrl.u32 %v81_v35, 16 }
  0x24   :  { %v258_v51 = vshrl.u32 %v82_v37, 16  ;;  %v259_v52 = vshrl.u32 %v83_v38, 16  ;;  %v269_v21 = vmul.u32 2246822507, %v261_v45  ;;  %v270_v53 = vmul.u32 2246822507, %v262_v46 }
  0x25   :  { %v149_v26 = vadd.s32 2654435769, %v141_v42  ;;  %v260_v54 = vshrl.u32 %v84_v19, 16  ;;  %v264_v27 = vxor.u32 %v256_v39, %v80_v25  ;;  %v271_v55 = vmul.u32 2246822507, %v263_v47 }
  0x26   :  { %v147_v56 = vxor.u32 %v139_v40, %v131_v28  ;;  %v150_v57 = vadd.s32 2654435769, %v142_v43  ;;  %v277_v58 = vshrl.u32 %v269_v21, 13  ;;  %v278_v59 = vshrl.u32 %v270_v53, 13 }
  0x27   :  { %v151_v60 = vadd.s32 2654435769, %v143_v44  ;;  %v152_v61 = vadd.s32 2654435769, %v144_v48  ;;  %v265_v62 = vxor.u32 %v257_v50, %v81_v35  ;;  %v279_v63 = vshrl.u32 %v271_v55, 13 }
  0x28   :  { %v266_v0 = vxor.u32 %v258_v51, %v82_v37  ;;  %v267_v1 = vxor.u32 %v259_v52, %v83_v38  ;;  %v285_v2 = vxor.u32 %v277_v58, %v269_v21  ;;  %v286_v3 = vxor.u32 %v278_v59, %v270_v53 }
  0x29   :  { %v153_v4 = vadd.s32 2654435769, %v145_v20  ;;  %v268_v6 = vxor.u32 %v260_v54, %v84_v19  ;;  %v272_v7 = vmul.u32 2246822507, %v264_v27  ;;  %v287_v8 = vxor.u32 %v279_v63, %v271_v55 }
  0x2a   :  { %v148_v9 = vxor.u32 %v140_v41, %v132_v29  ;;  %v154_v10 = vadd.s32 2654435769, %v146_v49  ;;  %v293_v11 = vmul.u32 3266489909, %v285_v2  ;;  %v294_v12 = vmul.u32 3266489909, %v286_v3 }
  0x2b   :  { %v157_v13 = vshrl.u32 %v149_v26, 16  ;;  %v158_v14 = vshrl.u32 %v150_v57, 16  ;;  %v273_v15 = vmul.u32 2246822507, %v265_v62  ;;  %v295_v22 = vmul.u32 3266489909, %v287_v8 }
  0x2c   :  { %v274_v23 = vmul.u32 2246822507, %v266_v0  ;;  %v275_v24 = vmul.u32 2246822507, %v267_v1  ;;  %v301_v25 = vshrl.u32 %v293_v11, 16  ;;  %v302_v28 = vshrl.u32 %v294_v12, 16 }
  0x2d   :  { %v155_v30 = vadd.s32 2654435769, %v147_v56  ;;  %v276_v31 = vmul.u32 2246822507, %v268_v6  ;;  %v280_v32 = vshrl.u32 %v272_v7, 13  ;;  %v303_v16 = vshrl.u32 %v295_v22, 16 }
  0x2e   :  { %v156_v33 = vadd.s32 2654435769, %v148_v9  ;;  %v159_v34 = vshrl.u32 %v151_v60, 16  ;;  %v309_v35 = vxor.u32 %v301_v25, %v293_v11  ;;  %v310_v36 = vxor.u32 %v302_v28, %v294_v12 }
  0x2f   :  { %v160_v29 = vshrl.u32 %v152_v61, 16  ;;  %v161_v17 = vshrl.u32 %v153_v4, 16  ;;  %v281_v18 = vshrl.u32 %v273_v15, 13  ;;  %v311_v37 = vxor.u32 %v303_v16, %v295_v22 }
  0x30   :  { %v282_v38 = vshrl.u32 %v274_v23, 13  ;;  %v283_v19 = vshrl.u32 %v275_v24, 13  ;;  %v317_v39 = vadd.s32 2654435769, %v309_v35  ;;  %v318_v40 = vadd.s32 2654435769, %v310_v36 }
  0x31   :  { %v162_v41 = vshrl.u32 %v154_v10, 16  ;;  %v2663_v42 = vxor.u32 %v157_v13, %v149_v26  ;;  %v284_v43 = vshrl.u32 %v276_v31, 13  ;;  %v288_v44 = vxor.u32 %v280_v32, %v272_v7 }
  0x32   :  { %v163_v45 = vshrl.u32 %v155_v30, 16  ;;  %v2665_v46 = vxor.u32 %v158_v14, %v150_v57  ;;  %v325_v47 = vshrl.u32 %v317_v39, 16  ;;  %v326_v48 = vshrl.u32 %v318_v40, 16 }
  0x33   :  { %v164_v20 = vshrl.u32 %v156_v33, 16  ;;  %v2667_v49 = vxor.u32 %v159_v34, %v151_v60  ;;  %v289_v50 = vxor.u32 %v281_v18, %v273_v15  ;;  %v319_v51 = vadd.s32 2654435769, %v311_v37 }
  0x34   :  { %v290_v52 = vxor.u32 %v282_v38, %v274_v23  ;;  %v291_v21 = vxor.u32 %v283_v19, %v275_v24  ;;  %v333_v53 = vxor.u32 %v325_v47, %v317_v39  ;;  %v334_v54 = vxor.u32 %v326_v48, %v318_v40 }
  0x35   :  { %v168_v27 = vxor.u32 %v160_v29, %v152_v61  ;;  %v173_v26 = vmul.u32 2246822507, %v2663_v42  ;;  %v292_v55 = vxor.u32 %v284_v43, %v276_v31  ;;  %v296_v56 = vmul.u32 3266489909, %v288_v44 }
  0x36   :  { %v169_v58 = vxor.u32 %v161_v17, %v153_v4  ;;  %v170_v59 = vxor.u32 %v162_v41, %v154_v10  ;;  %v341_v57 = vmul.u32 2246822507, %v333_v53  ;;  %v342_v62 = vmul.u32 2246822507, %v334_v54 }
  0x37   :  { %v171_v63 = vxor.u32 %v163_v45, %v155_v30  ;;  %v174_v0 = vmul.u32 2246822507, %v2665_v46  ;;  %v297_v60 = vmul.u32 3266489909, %v289_v50  ;;  %v327_v1 = vshrl.u32 %v319_v51, 16 }
  0x38   :  { %v298_v2 = vmul.u32 3266489909, %v290_v52  ;;  %v299_v3 = vmul.u32 3266489909, %v291_v21  ;;  %v349_v6 = vshrl.u32 %v341_v57, 13  ;;  %v350_v7 = vshrl.u32 %v342_v62, 13 }
  0x39   :  { %v172_v8 = vxor.u32 %v164_v20, %v156_v33  ;;  %v175_v61 = vmul.u32 2246822507, %v2667_v49  ;;  %v300_v9 = vmul.u32 3266489909, %v292_v55  ;;  %v304_v11 = vshrl.u32 %v296_v56, 16 }
  0x3a   :  { %v176_v12 = vmul.u32 2246822507, %v168_v27  ;;  %v177_v13 = vmul.u32 2246822507, %v169_v58  ;;  %v357_v4 = vxor.u32 %v349_v6, %v341_v57  ;;  %v358_v10 = vxor.u32 %v350_v7, %v342_v62 }
  0x3b   :  { %v178_v14 = vmul.u32 2246822507, %v170_v59  ;;  %v181_v15 = vshrl.u32 %v173_v26, 13  ;;  %v305_v22 = vshrl.u32 %v297_v60, 16  ;;  %v335_v23 = vxor.u32 %v327_v1, %v319_v51 }
  0x3c   :  { %v306_v24 = vshrl.u32 %v298_v2, 16  ;;  %v307_v25 = vshrl.u32 %v299_v3, 16  ;;  %v365_v28 = vmul.u32 3266489909, %v357_v4  ;;  %v366_v30 = vmul.u32 3266489909, %v358_v10 }
  0x3d   :  { %v179_v31 = vmul.u32 2246822507, %v171_v63  ;;  %v182_v32 = vshrl.u32 %v174_v0, 13  ;;  %v308_v16 = vshrl.u32 %v300_v9, 16  ;;  %v312_v33 = vxor.u32 %v304_v11, %v296_v56 }
  0x3e   :  { %v180_v34 = vmul.u32 2246822507, %v172_v8  ;;  %v183_v35 = vshrl.u32 %v175_v61, 13  ;;  %v373_v36 = vshrl.u32 %v365_v28, 16  ;;  %v374_v29 = vshrl.u32 %v366_v30, 16 }
  0x3f   :  { %v184_v17 = vshrl.u32 %v176_v12, 13  ;;  %v185_v18 = vshrl.u32 %v177_v13, 13  ;;  %v313_v37 = vxor.u32 %v305_v22, %v297_v60  ;;  %v343_v38 = vmul.u32 2246822507, %v335_v23 }
  0x40   :  { %v186_v19 = vshrl.u32 %v178_v14, 13  ;;  %v314_v39 = vxor.u32 %v306_v24, %v298_v2  ;;  %v315_v40 = vxor.u32 %v307_v25, %v299_v3  ;;  %v381_v41 = vxor.u32 %v373_v36, %v365_v28 }
  0x41   :  { %v189_v42 = vxor.u32 %v181_v15, %v173_v26  ;;  %v316_v43 = vxor.u32 %v308_v16, %v300_v9  ;;  %v320_v44 = vadd.s32 2654435769, %v312_v33  ;;  %v382_v45 = vxor.u32 %v374_v29, %v366_v30 }
  0x42   :  { %v187_v46 = vshrl.u32 %v179_v31, 13  ;;  %v188_v47 = vshrl.u32 %v180_v34, 13  ;;  %v190_v48 = vxor.u32 %v182_v32, %v174_v0  ;;  %v389_v20 = vshrl.u32 %v381_v41, 8 }
  0x43   :  { %v191_v49 = vxor.u32 %v183_v35, %v175_v61  ;;  %v192_v50 = vxor.u32 %v184_v17, %v176_v12  ;;  %v321_v51 = vadd.s32 2654435769, %v313_v37  ;;  %v351_v52 = vshrl.u32 %v343_v38, 13 }
  0x44   :  { %v193_v21 = vxor.u32 %v185_v18, %v177_v13  ;;  %v322_v53 = vadd.s32 2654435769, %v314_v39  ;;  %v323_v54 = vadd.s32 2654435769, %v315_v40  ;;  %v397_v27 = vcvt.s32.f32 %v389_v20 }
  0x45   :  { %v194_v55 = vxor.u32 %v186_v19, %v178_v14  ;;  %v324_v56 = vadd.s32 2654435769, %v316_v43  ;;  %v328_v58 = vshrl.u32 %v320_v44, 16  ;;  %v390_v59 = vshrl.u32 %v382_v45, 8 }
  0x46   :  { %v195_v26 = vxor.u32 %v187_v46, %v179_v31  ;;  %v197_v57 = vmul.u32 3266489909, %v189_v42  ;;  %v198_v62 = vmul.u32 3266489909, %v190_v48  ;;  %v405_v63 = vadd.f32 0.5, %v397_v27 }
  0x47   :  { %v196_v60 = vxor.u32 %v188_v47, %v180_v34  ;;  %v199_v1 = vmul.u32 3266489909, %v191_v49  ;;  %v329_v0 = vshrl.u32 %v321_v51, 16  ;;  %v359_v2 = vxor.u32 %v351_v52, %v343_v38 }
  0x48   :  { %v200_v3 = vmul.u32 3266489909, %v192_v50  ;;  %v201_v6 = vmul.u32 3266489909, %v193_v21  ;;  %v330_v7 = vshrl.u32 %v322_v53, 16  ;;  %v331_v8 = vshrl.u32 %v323_v54, 16 }
  0x49   :  { %v332_v61 = vshrl.u32 %v324_v56, 16  ;;  %v336_v9 = vxor.u32 %v328_v58, %v320_v44  ;;  %v398_v11 = vcvt.s32.f32 %v390_v59  ;;  %v413_v12 = vmul.f32 5.9604645e-08, %v405_v63 }
  0x4a   :  { %v202_v13 = vmul.u32 3266489909, %v194_v55  ;;  %v203_v4 = vmul.u32 3266489909, %v195_v26  ;;  %v205_v10 = vshrl.u32 %v197_v57, 16  ;;  %v206_v14 = vshrl.u32 %v198_v62, 16 }
  0x4b   :  { %v204_v15 = vmul.u32 3266489909, %v196_v60  ;;  %v207_v22 = vshrl.u32 %v199_v1, 16  ;;  %v337_v23 = vxor.u32 %v329_v0, %v321_v51  ;;  %v367_v24 = vmul.u32 3266489909, %v359_v2 }
  0x4c   :  { %v208_v25 = vshrl.u32 %v200_v3, 16  ;;  %v209_v28 = vshrl.u32 %v201_v6, 16  ;;  %v338_v30 = vxor.u32 %v330_v7, %v322_v53  ;;  %v339_v31 = vxor.u32 %v331_v8, %v323_v54 }
  0x4d   :  { %v340_v32 = vxor.u32 %v332_v61, %v324_v56  ;;  %v344_v16 = vmul.u32 2246822507, %v336_v9  ;;  %v406_v33 = vadd.f32 0.5, %v398_v11  ;;  %v2672_v34 = vmul.f32 6.2831855, %v413_v12 }
  0x4e   :  { %v210_v35 = vshrl.u32 %v202_v13, 16  ;;  %v211_v36 = vshrl.u32 %v203_v4, 16  ;;  %v213_v29 = vxor.u32 %v205_v10, %v197_v57  ;;  %v214_v17 = vxor.u32 %v206_v14, %v198_v62 }
  0x4f   :  { %v212_v18 = vshrl.u32 %v204_v15, 16  ;;  %v215_v37 = vxor.u32 %v207_v22, %v199_v1  ;;  %v345_v38 = vmul.u32 2246822507, %v337_v23  ;;  %v375_v19 = vshrl.u32 %v367_v24, 16 }
  0x50   :  { %v216_v39 = vxor.u32 %v208_v25, %v200_v3  ;;  %v217_v40 = vxor.u32 %v209_v28, %v201_v6  ;;  %v346_v41 = vmul.u32 2246822507, %v338_v30  ;;  %v347_v42 = vmul.u32 2246822507, %v339_v31 }
  0x51   :  { %v348_v43 = vmul.u32 2246822507, %v340_v32  ;;  %v352_v44 = vshrl.u32 %v344_v16, 13  ;;  %v414_v45 = vmul.f32 5.9604645e-08, %v406_v33  ;;  %v512_v46 = vand.u32 2139095040, %v2672_v34 }
  0x52   :  { %v218_v47 = vxor.u32 %v210_v35, %v202_v13  ;;  %v219_v48 = vxor.u32 %v211_v36, %v203_v4  ;;  %v221_v20 = vshrl.u32 %v213_v29, 8  ;;  %v222_v49 = vshrl.u32 %v214_v17, 8 }
  0x53   :  { %v220_v50 = vxor.u32 %v212_v18, %v204_v15  ;;  %v353_v51 = vshrl.u32 %v345_v38, 13  ;;  %v383_v52 = vxor.u32 %v375_v19, %v367_v24  ;;  %v513_v21 = vshrl.u32 %v512_v46, 23 }
  0x54   :  { %v223_v53 = vshrl.u32 %v215_v37, 8  ;;  %v224_v54 = vshrl.u32 %v216_v39, 8  ;;  %v354_v27 = vshrl.u32 %v346_v41, 13  ;;  %v355_v55 = vshrl.u32 %v347_v42, 13 }
  0x55   :  { %v356_v56 = vshrl.u32 %v348_v43, 13  ;;  %v360_v58 = vxor.u32 %v352_v44, %v344_v16  ;;  %v2675_v59 = vmul.f32 6.2831855, %v414_v45  ;;  %v2359_v26 = vadd.s32 4294967169, %v513_v21 }
  0x56   :  { %v225_v57 = vshrl.u32 %v217_v40, 8  ;;  %v226_v62 = vshrl.u32 %v218_v47, 8  ;;  %v229_v63 = vcvt.s32.f32 %v221_v20  ;;  %v230_v60 = vcvt.s32.f32 %v222_v49 }
  0x57   :  { %v227_v1 = vshrl.u32 %v219_v48, 8  ;;  %v228_v0 = vshrl.u32 %v220_v50, 8  ;;  %v361_v2 = vxor.u32 %v353_v51, %v345_v38  ;;  %v391_v3 = vshrl.u32 %v383_v52, 8 }
  0x58   :  { %v231_v6 = vcvt.s32.f32 %v223_v53  ;;  %v362_v7 = vxor.u32 %v354_v27, %v346_v41  ;;  %v363_v8 = vxor.u32 %v355_v55, %v347_v42  ;;  %v519_v61 = vadd.s32 1, %v2359_v26 }
  0x59   :  { %v232_v9 = vcvt.s32.f32 %v224_v54  ;;  %v364_v11 = vxor.u32 %v356_v56, %v348_v43  ;;  %v368_v12 = vmul.u32 3266489909, %v360_v58  ;;  %v615_v13 = vand.u32 2139095040, %v2675_v59 }
  0x5a   :  { %v233_v4 = vcvt.s32.f32 %v225_v57  ;;  %v234_v10 = vcvt.s32.f32 %v226_v62  ;;  %v237_v14 = vadd.f32 0.5, %v229_v63  ;;  %v238_v15 = vadd.f32 0.5, %v230_v60 }
  0x5b   :  { %v235_v22 = vcvt.s32.f32 %v227_v1  ;;  %v236_v23 = vcvt.s32.f32 %v228_v0  ;;  %v369_v24 = vmul.u32 3266489909, %v361_v2  ;;  %v399_v25 = vcvt.s32.f32 %v391_v3 }
  0x5c   :  { %v239_v28 = vadd.f32 0.5, %v231_v6  ;;  %v370_v30 = vmul.u32 3266489909, %v362_v7  ;;  %v371_v31 = vmul.u32 3266489909, %v363_v8  ;;  %vm520_vm0 = vcmp.gt.s32.totalorder %v519_v61, 0 }
  0x5d   :  { %v240_v32 = vadd.f32 0.5, %v232_v9  ;;  %v372_v16 = vmul.u32 3266489909, %v364_v11  ;;  %v376_v33 = vshrl.u32 %v368_v12, 16  ;;  %v616_v35 = vshrl.u32 %v615_v13, 23 }
  0x5e   :  { %v241_v36 = vadd.f32 0.5, %v233_v4  ;;  %v242_v29 = vadd.f32 0.5, %v234_v10  ;;  %v245_v17 = vmul.f32 5.9604645e-08, %v237_v14  ;;  %v246_v18 = vmul.f32 5.9604645e-08, %v238_v15 }
  0x5f   :  { %v243_v37 = vadd.f32 0.5, %v235_v22  ;;  %v377_v38 = vshrl.u32 %v369_v24, 16  ;;  %v407_v19 = vadd.f32 0.5, %v399_v25  ;;  %v521_v39 = vsel %vm520_vm0, %v519_v61, 0 }
  0x60   :  { %v2678_v40 = vadd.f32 0.5, %v236_v23  ;;  %v378_v41 = vshrl.u32 %v370_v30, 16  ;;  %v379_v42 = vshrl.u32 %v371_v31, 16  ;;  %v3873_v43 = vand.u32 2147483647, %v2672_v34 }
  0x61   :  { %v2681_v44 = vmul.f32 5.9604645e-08, %v239_v28  ;;  %v380_v45 = vshrl.u32 %v372_v16, 16  ;;  %v2683_v46 = vxor.u32 %v376_v33, %v368_v12  ;;  %v2363_v47 = vadd.s32 4294967169, %v616_v35 }
  0x62   :  { %v2685_v48 = vmul.f32 5.9604645e-08, %v240_v32  ;;  %v2687_v20 = vmul.f32 5.9604645e-08, %v241_v36  ;;  %v2689_v49 = vmul.f32 5.9604645e-08, %v242_v29  ;;  %v523_v50 = vand.u32 31, %v521_v39 }
  0x63   :  { %v2691_v51 = vmul.f32 5.9604645e-08, %v243_v37  ;;  %v2693_v52 = vxor.u32 %v377_v38, %v369_v24  ;;  %v415_v21 = vmul.f32 5.9604645e-08, %v407_v19  ;;  %2484 = vlog2.f32 %v245_v17 }
  0x64   :  { %v2695_v53 = vxor.u32 %v378_v41, %v370_v30  ;;  %v2697_v54 = vxor.u32 %v379_v42, %v371_v31  ;;  %2486 = vlog2.f32 %v246_v18  ;;  %v516_v27 = vand.u32 8388607, %v3873_v43 }
  0x65   :  { %v2701_v55 = vxor.u32 %v380_v45, %v372_v16  ;;  %v392_v56 = vshrl.u32 %v2683_v46, 8  ;;  %v522_v58 = vshrl.u32 %v521_v39, 5  ;;  %v622_v26 = vadd.s32 1, %v2363_v47 }
  0x66   :  { %v524_v57 = vsub.s32 32, %v523_v50  ;;  %v3886_v62 = vmov 683565275   ;;  %v3884_v60 = vmov 2475754826   ;;  %v393_v3 = vshrl.u32 %v2693_v52, 8 }
  0x67   :  { %v526_v63 = vshll.u32 %v3886_v62, %v523_v50  ;;  %v529_v1 = vshll.u32 %v3884_v60, %v523_v50  ;;  %v3881_v0 = vmov 2131351028   ;;  %v2708_v6 = vmul.f32 6.2831855, %v415_v21 }
  0x68   :  { %v532_v2 = vshll.u32 %v3881_v0, %v523_v50  ;;  %v3879_v7 = vmov 2102212464   ;;  %v3875_v61 = vmov 920167782   ;;  %v517_v11 = vor.u32 8388608, %v516_v27 }
  0x69   :  { %v535_v8 = vshll.u32 %v3879_v7, %v523_v50  ;;  %v538_v9 = vshll.u32 %v3875_v61, %v523_v50  ;;  %v527_v12 = vshrl.u32 %v3884_v60, %v524_v57  ;;  %v530_v13 = vshrl.u32 %v3881_v0, %v524_v57 }
  0x6a   :  { %v533_v4 = vshrl.u32 %v3879_v7, %v524_v57  ;;  %v536_v10 = vshrl.u32 %v3875_v61, %v524_v57  ;;  %v3877_v14 = vmov 1326507024   ;;  %vm541_vm1 = vcmp.lt.s32.totalorder %v522_v58, 1 }
  0x6b   :  { %v539_v15 = vshrl.u32 %v3877_v14, %v524_v57  ;;  %vm623_vm2 = vcmp.gt.s32.totalorder %v622_v26, 0  ;;  %v528_v22 = vor.u32 %v527_v12, %v526_v63  ;;  %v531_v23 = vor.u32 %v530_v13, %v529_v1 }
  0x6c   :  { %v534_v24 = vor.u32 %v533_v4, %v532_v2  ;;  %vm544_vm3 = vcmp.lt.s32.totalorder %v522_v58, 4  ;;  %v525_v25 = vshrl.u32 %v3886_v62, %v524_v57  ;;  %v537_v28 = vor.u32 %v536_v10, %v535_v8 }
  0x6d   :  { %v540_v30 = vor.u32 %v539_v15, %v538_v9  ;;  %vm543_vm4 = vcmp.lt.s32.totalorder %v522_v58, 3  ;;  %v2718_v32 = vshll.u32 %v517_v11, 8  ;;  %v3872_v16 = vand.u32 2147483647, %v2675_v59 }
  0x6e   :  { %v546_v31 = vsel %vm544_vm3, %v534_v24, 2102212464  ;;  %v718_v33 = vand.u32 2139095040, %v2708_v6  ;;  %vm542_vm5 = vcmp.lt.s32.totalorder %v522_v58, 2  ;;  %v549_v35 = vsel %vm541_vm1, %v528_v22, %v531_v23 }
  0x6f   :  { %v550_v36 = vsel %vm544_vm3, %v537_v28, 920167782  ;;  %v553_v29 = vsel %vm541_vm1, %v531_v23, %v534_v24  ;;  %v394_v17 = vshrl.u32 %v2695_v53, 8  ;;  %v554_v37 = vsel %vm544_vm3, %v540_v30, 1326507024 }
  0x70   :  { %v551_v18 = vsel %vm543_vm4, %v534_v24, %v550_v36  ;;  %v624_v38 = vsel %vm623_vm2, %v622_v26, 0  ;;  %v395_v19 = vshrl.u32 %v2697_v54, 8  ;;  %v545_v39 = vsel %vm541_vm1, %v525_v25, %v528_v22  ;;  %v2485_v45 = vpop.eup %2484 }
  0x71   :  { %v547_v41 = vsel %vm543_vm4, %v531_v23, %v546_v31  ;;  %v555_v42 = vsel %vm543_vm4, %v537_v28, %v554_v37  ;;  %v552_v46 = vsel %vm542_vm5, %v549_v35, %v551_v18  ;;  %v619_v50 = vand.u32 8388607, %v3872_v16  ;;  %v2487_v21 = vpop.eup %2486 }
  0x72   :  { %v556_v47 = vsel %vm542_vm5, %v553_v29, %v555_v42  ;;  %v719_v52 = vshrl.u32 %v718_v33, 23  ;;  %v625_v54 = vshrl.u32 %v624_v38, 5  ;;  %v626_v26 = vand.u32 31, %v624_v38 }
  0x73   :  { %v2736_v53 = vmul.u32.u64.low %v2718_v32, %v556_v47  ;;  %v2737_v27 = vmul.u32.u64.high %v2718_v32, %v556_v47, %v2736_v53  ;;  %v396_v57 = vshrl.u32 %v2701_v55, 8  ;;  %v2740_v63 = vcvt.s32.f32 %v392_v56 }
  0x74   :  { %v2742_v1 = vcvt.s32.f32 %v393_v3  ;;  %v548_v2 = vsel %vm542_vm5, %v545_v39, %v547_v41  ;;  %v402_v8 = vcvt.s32.f32 %v394_v17  ;;  %v2745_v9 = vcvt.s32.f32 %v395_v19 }
  0x75   :  { %v2748_v11 = vmul.u32.u64.low %v2718_v32, %v552_v46  ;;  %v2749_v12 = vmul.u32.u64.high %v2718_v32, %v552_v46, %v2748_v11  ;;  %2488 = vlog2.f32 %v2681_v44  ;;  %v627_v13 = vsub.s32 32, %v626_v26 }
  0x76   :  { %v629_v4 = vshll.u32 %v3886_v62, %v626_v26  ;;  %v632_v55 = vshll.u32 %v3884_v60, %v626_v26  ;;  %v564_v56 = vmul.u32 %v2718_v32, %v548_v2  ;;  %v620_v3 = vor.u32 8388608, %v619_v50 }
  0x77   :  { %vm644_vm6 = vcmp.lt.s32.totalorder %v625_v54, 1  ;;  %v2367_v58 = vadd.s32 4294967169, %v719_v52  ;;  %vm566_vm7 = vc.u32 %v2737_v27, %v2748_v11  ;;  %v628_v10 = vshrl.u32 %v3886_v62, %v627_v13 }
  0x78   :  { %v630_v15 = vshrl.u32 %v3884_v60, %v627_v13  ;;  %v633_v22 = vshrl.u32 %v3881_v0, %v627_v13  ;;  %v567_v44 = vadd.s32 1, %v2749_v12  ;;  %v635_v23 = vshll.u32 %v3881_v0, %v626_v26 }
  0x79   :  { %v636_v24 = vshrl.u32 %v3879_v7, %v627_v13  ;;  %v638_v25 = vshll.u32 %v3879_v7, %v626_v26  ;;  %v639_v31 = vshrl.u32 %v3875_v61, %v627_v13  ;;  %v641_v32 = vshll.u32 %v3875_v61, %v626_v26 }
  0x7a   :  { %v631_v28 = vor.u32 %v630_v15, %v629_v4  ;;  %v634_v30 = vor.u32 %v633_v22, %v632_v55  ;;  %v568_v33 = vsel %vm566_vm7, %v567_v44, %v2749_v12  ;;  %v642_v36 = vshrl.u32 %v3877_v14, %v627_v13 }
  0x7b   :  { %v637_v35 = vor.u32 %v636_v24, %v635_v23  ;;  %v725_v29 = vadd.s32 1, %v2367_v58  ;;  %v640_v17 = vor.u32 %v639_v31, %v638_v25  ;;  %vm646_vm8 = vcmp.lt.s32.totalorder %v625_v54, 3 }
  0x7c   :  { %vm647_vm9 = vcmp.lt.s32.totalorder %v625_v54, 4  ;;  %v660_v18 = vshll.u32 %v620_v3, 8  ;;  %v643_v37 = vor.u32 %v642_v36, %v641_v32  ;;  %vm645_vm10 = vcmp.lt.s32.totalorder %v625_v54, 2 }
  0x7d   :  { %v649_v38 = vsel %vm647_vm9, %v637_v35, 2102212464  ;;  %v652_v19 = vsel %vm644_vm6, %v631_v28, %v634_v30  ;;  %v2770_v39 = vadd.s32 %v568_v33, %v564_v56  ;;  %v648_v41 = vsel %vm644_vm6, %v628_v10, %v631_v28 }
  0x7e   :  { %v653_v42 = vsel %vm647_vm9, %v640_v17, 920167782  ;;  %v656_v46 = vsel %vm644_vm6, %v634_v30, %v637_v35  ;;  %v650_v47 = vsel %vm646_vm8, %v634_v30, %v649_v38  ;;  %v657_v52 = vsel %vm647_vm9, %v643_v37, 1326507024 }
  0x7f   :  { %v654_v50 = vsel %vm646_vm8, %v637_v35, %v653_v42  ;;  %vm726_vm11 = vcmp.gt.s32.totalorder %v725_v29, 0  ;;  %v422_v53 = vmul.f32 0.6931472, %v2485_v45  ;;  %2490 = vlog2.f32 %v2685_v48 }
  0x80   :  { %v655_v26 = vsel %vm645_vm10, %v652_v19, %v654_v50  ;;  %v658_v2 = vsel %vm646_vm8, %v640_v17, %v657_v52  ;;  %v727_v55 = vsel %vm726_vm11, %v725_v29, 0  ;;  %v424_v56 = vmul.f32 0.6931472, %v2487_v21 }
  0x81   :  { %v659_v12 = vsel %vm645_vm10, %v656_v46, %v658_v2  ;;  %v2780_v13 = vmul.u32.u64.low %v660_v18, %v655_v26  ;;  %v2781_v4 = vmul.u32.u64.high %v660_v18, %v655_v26, %v2780_v13  ;;  %v651_v3 = vsel %vm645_vm10, %v648_v41, %v650_v47 }
  0x82   :  { %v2785_v58 = vmul.u32.u64.low %v660_v18, %v659_v12  ;;  %v2786_v10 = vmul.u32.u64.high %v660_v18, %v659_v12, %v2785_v58  ;;  %v2489_v45 = vpop.eup %2488  ;;  %v252_v48 = vmul.f32 5.9604645e-08, %v2678_v40  ;;  %v404_v15 = vcvt.s32.f32 %v396_v57 }
  0x83   :  { %v570_v22 = vadd.s32 536870912, %v2770_v39  ;;  %v729_v44 = vand.u32 31, %v727_v55  ;;  %v408_v23 = vadd.f32 0.5, %v2740_v63  ;;  %v409_v24 = vadd.f32 0.5, %v2742_v1 }
  0x84   :  { %v410_v25 = vadd.f32 0.5, %v402_v8  ;;  %v2792_v28 = vmul.f32 -2.0, %v422_v53  ;;  %2492 = vlog2.f32 %v2687_v20  ;;  %v667_v21 = vmul.u32 %v660_v18, %v651_v3 }
  0x85   :  { %v670_v54 = vadd.s32 1, %v2781_v4  ;;  %v730_v30 = vsub.s32 32, %v729_v44  ;;  %v411_v31 = vadd.f32 0.5, %v2745_v9  ;;  %2494 = vlog2.f32 %v2689_v49 }
  0x86   :  { %v2798_v40 = vmul.f32 -2.0, %v424_v56  ;;  %vm669_vm12 = vc.u32 %v2786_v10, %v2780_v13  ;;  %2496 = vlog2.f32 %v2691_v51  ;;  %v2803_v57 = vshrl.u32 %v570_v22, 30 }
  0x87   :  { %v671_v63 = vsel %vm669_vm12, %v670_v54, %v2781_v4  ;;  %v3871_v20 = vand.u32 2147483647, %v2708_v6  ;;  %v416_v1 = vmul.f32 5.9604645e-08, %v408_v23  ;;  %2498 = vrsqrt.f32 %v2792_v28 }
  0x88   :  { %v2808_v8 = vshrl.u32 %v727_v55, 5  ;;  %v732_v49 = vshll.u32 %v3886_v62, %v729_v44  ;;  %v2811_v9 = vadd.s32 %v671_v63, %v667_v21  ;;  %v733_v32 = vshrl.u32 %v3884_v60, %v730_v30 }
  0x89   :  { %v735_v33 = vshll.u32 %v3884_v60, %v729_v44  ;;  %v736_v51 = vshrl.u32 %v3881_v0, %v730_v30  ;;  %v738_v35 = vshll.u32 %v3881_v0, %v729_v44  ;;  %v739_v36 = vshrl.u32 %v3879_v7, %v730_v30 }
  0x8a   :  { %v741_v29 = vshll.u32 %v3879_v7, %v729_v44  ;;  %v742_v17 = vshrl.u32 %v3875_v61, %v730_v30  ;;  %v412_v18 = vadd.f32 0.5, %v404_v15  ;;  %2500 = vrsqrt.f32 %v2798_v40 }
  0x8b   :  { %v572_v37 = vshll.u32 %v2803_v57, 30  ;;  %v722_v38 = vand.u32 8388607, %v3871_v20  ;;  %2502 = vlog2.f32 %v252_v48  ;;  %v673_v19 = vadd.s32 536870912, %v2811_v9 }
  0x8c   :  { %v744_v41 = vshll.u32 %v3875_v61, %v729_v44  ;;  %v745_v42 = vshrl.u32 %v3877_v14, %v730_v30  ;;  %v2491_v46 = vpop.eup %2490  ;;  %v426_v47 = vmul.f32 0.6931472, %v2489_v45  ;;  %v734_v50 = vor.u32 %v733_v32, %v732_v49 }
  0x8d   :  { %v737_v52 = vor.u32 %v736_v51, %v735_v33  ;;  %v743_v53 = vor.u32 %v742_v17, %v741_v29  ;;  %v2827_v26 = vmul.f32 6.2831855, %v416_v1  ;;  %v740_v2 = vor.u32 %v739_v36, %v738_v35 }
  0x8e   :  { %vm747_vm13 = vcmp.lt.s32.totalorder %v2808_v8, 1  ;;  %vm750_vm14 = vcmp.lt.s32.totalorder %v2808_v8, 4  ;;  %v417_v12 = vmul.f32 5.9604645e-08, %v409_v24  ;;  %v2832_v4 = vsub.s32 %v2770_v39, %v572_v37 }
  0x8f   :  { %v723_v55 = vor.u32 8388608, %v722_v38  ;;  %vm749_vm15 = vcmp.lt.s32.totalorder %v2808_v8, 3  ;;  %v418_v56 = vmul.f32 5.9604645e-08, %v410_v25  ;;  %v428_v3 = vmul.f32 0.6931472, %v2491_v46 }
  0x90   :  { %v2835_v58 = vshrl.u32 %v673_v19, 30  ;;  %v746_v45 = vor.u32 %v745_v42, %v744_v41  ;;  %v2837_v48 = vmul.f32 -2.0, %v426_v47  ;;  %vm748_vm0 = vcmp.lt.s32.totalorder %v2808_v8, 2 }
  0x91   :  { %v755_v15 = vsel %vm747_vm13, %v734_v50, %v737_v52  ;;  %v756_v22 = vsel %vm750_vm14, %v743_v53, 920167782  ;;  %v2493_v39 = vpop.eup %2492  ;;  %v419_v44 = vmul.f32 5.9604645e-08, %v411_v31  ;;  %v731_v23 = vshrl.u32 %v3886_v62, %v730_v30 }
  0x92   :  { %v757_v24 = vsel %vm749_vm15, %v740_v2, %v756_v22  ;;  %v821_v25 = vand.u32 2139095040, %v2827_v26  ;;  %v2495_v21 = vpop.eup %2494  ;;  %v420_v54 = vmul.f32 5.9604645e-08, %v412_v18  ;;  %v575_v63 = vsub.s32 0, %v2832_v4 }
  0x93   :  { %v752_v1 = vsel %vm750_vm14, %v740_v2, 2102212464  ;;  %v763_v49 = vshll.u32 %v723_v55, 8  ;;  %v2497_v32 = vpop.eup %2496  ;;  %v675_v33 = vshll.u32 %v2835_v58, 30  ;;  %v758_v31 = vsel %vm748_vm0, %v755_v15, %v757_v24 }
  0x94   :  { %v759_v30 = vsel %vm747_vm13, %v737_v52, %v740_v2  ;;  %v760_v51 = vsel %vm750_vm14, %v746_v45, 1326507024  ;;  %v2499_v35 = vpop.eup %2498  ;;  %v2858_v36 = vmul.f32 -2.0, %v428_v3  ;;  %vm447_vm1 = vcmp.eq.f32.partialorder %v2792_v28, inf }
  0x95   :  { %2504 = vrsqrt.f32 %v2837_v48  ;;  %v2862_v29 = vmul.f32 6.2831855, %v417_v12  ;;  %v751_v17 = vsel %vm747_vm13, %v731_v23, %v734_v50  ;;  %v753_v18 = vsel %vm749_vm15, %v737_v52, %v752_v1 }
  0x96   :  { %v761_v37 = vsel %vm749_vm15, %v743_v53, %v760_v51  ;;  %v822_v38 = vshrl.u32 %v821_v25, 23  ;;  %vm449_vm2 = vcmp.eq.f32.partialorder %v2792_v28, 0.0  ;;  %v2360_v19 = vmin.u32 %v575_v63, %v2832_v4 }
  0x97   :  { %v762_v41 = vsel %vm748_vm0, %v759_v30, %v761_v37  ;;  %v2874_v42 = vmul.u32.u64.low %v763_v49, %v758_v31  ;;  %v2875_v46 = vmul.u32.u64.high %v763_v49, %v758_v31, %v2874_v42  ;;  %v2501_v47 = vpop.eup %2500  ;;  %v2879_v50 = vsub.s32 %v2811_v9, %v675_v33 }
  0x98   :  { %v2881_v52 = vmul.u32.u64.low %v763_v49, %v762_v41  ;;  %v2882_v2 = vmul.u32.u64.high %v763_v49, %v762_v41, %v2881_v52  ;;  %v2371_v53 = vadd.s32 4294967169, %v822_v38  ;;  %v2503_v12 = vpop.eup %2502  ;;  %v450_v55 = vand.u32 2147483648, %v2792_v28 }
  0x99   :  { %vm454_vm3 = vcmp.eq.f32.partialorder %v2798_v40, inf  ;;  %2506 = vrsqrt.f32 %v2858_v36  ;;  %v754_v3 = vsel %vm748_vm0, %v751_v17, %v753_v18  ;;  %v430_v45 = vmul.f32 0.6931472, %v2493_v39 }
  0x9a   :  { %v432_v15 = vmul.f32 0.6931472, %v2495_v21  ;;  %vm456_vm4 = vcmp.eq.f32.partialorder %v2798_v40, 0.0  ;;  %v828_v9 = vadd.s32 1, %v2371_v53  ;;  %v434_v22 = vmul.f32 0.6931472, %v2497_v32 }
  0x9b   :  { %v446_v23 = vmul.f32 %v2499_v35, %v2792_v28  ;;  %v453_v24 = vmul.f32 %v2501_v47, %v2798_v40  ;;  %v773_v25 = vadd.s32 1, %v2875_v46  ;;  %v577_v63 = vclz %v2360_v19 }
  0x9c   :  { %v678_v1 = vsub.s32 0, %v2879_v50  ;;  %v770_v33 = vmul.u32 %v763_v49, %v754_v3  ;;  %vm772_vm5 = vc.u32 %v2882_v2, %v2874_v42  ;;  %v436_v8 = vmul.f32 0.6931472, %v2503_v12 }
  0x9d   :  { %v457_v39 = vand.u32 2147483648, %v2798_v40  ;;  %v2897_v21 = vmul.f32 6.2831855, %v418_v56  ;;  %v774_v32 = vsel %vm772_vm5, %v773_v25, %v2875_v46  ;;  %v2900_v31 = vmul.f32 -2.0, %v430_v45 }
  0x9e   :  { %v2902_v30 = vmul.f32 -2.0, %v432_v15  ;;  %v2904_v51 = vmul.f32 6.2831855, %v419_v44  ;;  %vm829_vm6 = vcmp.gt.s32.totalorder %v828_v9, 0  ;;  %v2906_v35 = vmul.f32 -2.0, %v434_v22 }
  0x9f   :  { %v448_v49 = vsel %vm447_vm1, %v2792_v28, %v446_v23  ;;  %v455_v56 = vsel %vm454_vm3, %v2798_v40, %v453_v24  ;;  %v830_v17 = vsel %vm829_vm6, %v828_v9, 0  ;;  %v2361_v18 = vadd.s32 4294967294, %v577_v63 }
  0xa0   :  { %v2364_v37 = vmin.u32 %v678_v1, %v2879_v50  ;;  %v2915_v38 = vadd.s32 %v774_v32, %v770_v33  ;;  %v832_v19 = vand.u32 31, %v830_v17  ;;  %v2917_v44 = vmul.f32 -2.0, %v436_v8 }
  0xa1   :  { %v464_v41 = vand.u32 2147483648, %v2837_v48  ;;  %v2920_v46 = vmul.f32 6.2831855, %v420_v54  ;;  %v3874_v47 = vand.u32 2147483647, %v2827_v26  ;;  %v2925_v53 = vsel %vm449_vm2, %v450_v55, %v448_v49 }
  0xa2   :  { %v2505_v52 = vpop.eup %2504  ;;  %v471_v12 = vand.u32 2147483648, %v2858_v36  ;;  %2508 = vrsqrt.f32 %v2900_v31  ;;  %v833_v3 = vsub.s32 32, %v832_v19  ;;  %v2931_v45 = vsel %vm456_vm4, %v457_v39, %v455_v56 }
  0xa3   :  { %2510 = vrsqrt.f32 %v2902_v30  ;;  %vm2362_vm7 = vcmp.lt.s32.totalorder %v2361_v18, 0  ;;  %v680_v28 = vclz %v2364_v37  ;;  %v776_v55 = vadd.s32 536870912, %v2915_v38 }
  0xa4   :  { %2512 = vrsqrt.f32 %v2906_v35  ;;  %v835_v9 = vshll.u32 %v3886_v62, %v832_v19  ;;  %v838_v22 = vshll.u32 %v3884_v60, %v832_v19  ;;  %v844_v40 = vshll.u32 %v3879_v7, %v832_v19 }
  0xa5   :  { %v845_v23 = vshrl.u32 %v3875_v61, %v833_v3  ;;  %v836_v25 = vshrl.u32 %v3884_v60, %v833_v3  ;;  %v839_v63 = vshrl.u32 %v3881_v0, %v833_v3  ;;  %v841_v1 = vshll.u32 %v3881_v0, %v832_v19 }
  0xa6   :  { %v2507_v24 = vpop.eup %2506  ;;  %v842_v33 = vshrl.u32 %v3879_v7, %v833_v3  ;;  %vm461_vm8 = vcmp.eq.f32.partialorder %v2837_v48, inf  ;;  %v2947_v8 = vsel %vm2362_vm7, 0, %v2361_v18  ;;  %v825_v39 = vand.u32 8388607, %v3874_v47 }
  0xa7   :  { %v831_v32 = vshrl.u32 %v830_v17, 5  ;;  %v847_v49 = vshll.u32 %v3875_v61, %v832_v19  ;;  %v2953_v37 = vshrl.u32 %v776_v55, 30  ;;  %v848_v20 = vshrl.u32 %v3877_v14, %v833_v3 }
  0xa8   :  { %v924_v16 = vand.u32 2139095040, %v2862_v29  ;;  %v460_v54 = vmul.f32 %v2505_v52, %v2837_v48  ;;  %v467_v15 = vmul.f32 %v2507_v24, %v2858_v36  ;;  %v2365_v18 = vadd.s32 4294967294, %v680_v28 }
  0xa9   :  { %v846_v43 = vor.u32 %v845_v23, %v844_v40  ;;  %vm463_vm9 = vcmp.eq.f32.partialorder %v2837_v48, 0.0  ;;  %vm468_vm10 = vcmp.eq.f32.partialorder %v2858_v36, inf  ;;  %v585_v17 = vsub.s32 4294967266, %v2947_v8 }
  0xaa   :  { %v837_v19 = vor.u32 %v836_v25, %v835_v9  ;;  %v840_v47 = vor.u32 %v839_v63, %v838_v22  ;;  %v843_v55 = vor.u32 %v842_v33, %v841_v1  ;;  %v826_v56 = vor.u32 8388608, %v825_v39 }
  0xab   :  { %v849_v61 = vor.u32 %v848_v20, %v847_v49  ;;  %vm850_vm11 = vcmp.lt.s32.totalorder %v831_v32, 1  ;;  %vm853_vm12 = vcmp.lt.s32.totalorder %v831_v32, 4  ;;  %v565_v52 = vadd.s32 %v2748_v11, %v2737_v27 }
  0xac   :  { %v778_v24 = vshll.u32 %v2953_v37, 30  ;;  %vm852_vm13 = vcmp.lt.s32.totalorder %v831_v32, 3  ;;  %v925_v28 = vshrl.u32 %v924_v16, 23  ;;  %v581_v40 = vsub.s32 32, %v2947_v8 }
  0xad   :  { %vm2366_vm14 = vcmp.lt.s32.totalorder %v2365_v18, 0  ;;  %v834_v23 = vshrl.u32 %v3886_v62, %v833_v3  ;;  %v859_v9 = vsel %vm853_vm12, %v846_v43, 920167782  ;;  %vm470_vm15 = vcmp.eq.f32.partialorder %v2858_v36, 0.0 }
  0xae   :  { %vm851_vm0 = vcmp.lt.s32.totalorder %v831_v32, 2  ;;  %v855_v20 = vsel %vm853_vm12, %v843_v55, 2102212464  ;;  %v858_v22 = vsel %vm850_vm11, %v837_v19, %v840_v47  ;;  %v862_v27 = vsel %vm850_vm11, %v840_v47, %v843_v55 }
  0xaf   :  { %v2509_v11 = vpop.eup %2508  ;;  %vm475_vm1 = vcmp.eq.f32.partialorder %v2900_v31, inf  ;;  %vm482_vm2 = vcmp.eq.f32.partialorder %v2902_v30, inf  ;;  %v586_v16 = vadd.s32 127, %v585_v17  ;;  %v860_v25 = vsel %vm852_vm13, %v843_v55, %v859_v9 }
  0xb0   :  { %v863_v3 = vsel %vm853_vm12, %v849_v61, 1326507024  ;;  %v866_v63 = vshll.u32 %v826_v56, 8  ;;  %v2511_v1 = vpop.eup %2510  ;;  %v2977_v33 = vsel %vm2366_vm14, 0, %v2365_v18  ;;  %v2980_v39 = vsub.s32 %v2915_v38, %v778_v24 }
  0xb1   :  { %v864_v49 = vsel %vm852_vm13, %v846_v43, %v863_v3  ;;  %v2375_v14 = vadd.s32 4294967169, %v925_v28  ;;  %v2513_v7 = vpop.eup %2512  ;;  %v854_v0 = vsel %vm850_vm11, %v834_v23, %v837_v19  ;;  %v856_v17 = vsel %vm852_vm13, %v840_v47, %v855_v20 }
  0xb2   :  { %v861_v55 = vsel %vm851_vm0, %v858_v22, %v860_v25  ;;  %v865_v61 = vsel %vm851_vm0, %v862_v27, %v864_v49  ;;  %v462_v56 = vsel %vm461_vm8, %v2837_v48, %v460_v54  ;;  %2514 = vrsqrt.f32 %v2917_v44 }
  0xb3   :  { %v582_v38 = vshll.u32 %v2832_v4, %v2947_v8  ;;  %v583_v43 = vshrl.u32 %v565_v52, %v581_v40  ;;  %v688_v19 = vsub.s32 4294967266, %v2977_v33  ;;  %v781_v28 = vsub.s32 0, %v2980_v39 }
  0xb4   :  { %v2995_v24 = vmul.u32.u64.low %v866_v63, %v865_v61  ;;  %v2996_v47 = vmul.u32.u64.high %v866_v63, %v865_v61, %v2995_v24  ;;  %v857_v23 = vsel %vm851_vm0, %v854_v0, %v856_v17  ;;  %v3008_v4 = vsel %vm463_vm9, %v464_v41, %v462_v56 }
  0xb5   :  { %v3000_v9 = vmul.u32.u64.low %v866_v63, %v861_v55  ;;  %v3001_v20 = vmul.u32.u64.high %v866_v63, %v861_v55, %v3000_v9  ;;  %v469_v54 = vsel %vm468_vm10, %v2858_v36, %v467_v15  ;;  %v587_v8 = vshll.u32 %v586_v16, 23 }
  0xb6   :  { %v931_v52 = vadd.s32 1, %v2375_v14  ;;  %v474_v40 = vmul.f32 %v2509_v11, %v2900_v31  ;;  %v481_v0 = vmul.f32 %v2511_v1, %v2902_v30  ;;  %v584_v32 = vor.u32 %v583_v43, %v582_v38 }
  0xb7   :  { %v668_v22 = vadd.s32 %v2780_v13, %v2786_v10  ;;  %v684_v27 = vsub.s32 32, %v2977_v33  ;;  %v873_v25 = vmul.u32 %v866_v63, %v857_v23  ;;  %vm875_vm3 = vc.u32 %v2996_v47, %v3000_v9 }
  0xb8   :  { %vm932_vm4 = vcmp.gt.s32.totalorder %v931_v52, 0  ;;  %v689_v48 = vadd.s32 127, %v688_v19  ;;  %v2368_v41 = vmin.u32 %v781_v28, %v2980_v39  ;;  %v876_v14 = vadd.s32 1, %v3001_v20 }
  0xb9   :  { %v933_v15 = vsel %vm932_vm4, %v931_v52, 0  ;;  %v3026_v11 = vsel %vm470_vm15, %v471_v12, %v469_v54  ;;  %v588_v13 = vor.u32 4788187, %v587_v8  ;;  %v3883_v10 = vand.u32 2147483647, %v2862_v29 }
  0xba   :  { %3899 = vst [vmem:[#allocation9_spill] sm:$0xff] %v3026_v11  ;;  %v935_v16 = vand.u32 31, %v933_v15  ;;  %v3032_v3 = vsel %vm475_vm1, %v2900_v31, %v474_v40  ;;  %v3037_v63 = vsel %vm482_vm2, %v2902_v30, %v481_v0  ;;  %v3040_v1 = vmul.f32 %v2513_v7, %v2906_v35 }
  0xbb   :  { %v877_v36 = vsel %vm875_vm3, %v876_v14, %v3001_v20  ;;  %v591_v12 = vcvt.s32.f32 %v584_v32  ;;  %v685_v61 = vshll.u32 %v2879_v50, %v2977_v33  ;;  %v686_v56 = vshrl.u32 %v668_v22, %v684_v27 }
  0xbc   :  { %v878_v17 = vadd.s32 %v877_v36, %v873_v25  ;;  %v936_v55 = vsub.s32 32, %v935_v16  ;;  %v690_v38 = vshll.u32 %v689_v48, 23  ;;  %v783_v43 = vclz %v2368_v41 }
  0xbd   :  { %v589_v19 = vand.u32 2147483647, %v588_v13  ;;  %v928_v28 = vand.u32 8388607, %v3883_v10  ;;  %v3048_v7 = vshrl.u32 %v933_v15, 5  ;;  %v938_v23 = vshll.u32 %v3886_v62, %v935_v16 }
  0xbe   :  { %v879_v24 = vadd.s32 536870912, %v878_v17  ;;  %v939_v20 = vshrl.u32 %v3884_v60, %v936_v55  ;;  %v941_v54 = vshll.u32 %v3884_v60, %v935_v16  ;;  %v3900_v8 = vmov 2131351028  }
  0xbf   :  { %v942_v52 = vshrl.u32 %v3900_v8, %v936_v55  ;;  %v3054_v40 = vpop.eup %2514  ;;  %v944_v33 = vshll.u32 %v3900_v8, %v935_v16  ;;  %v3901_v0 = vmov 2102212464   ;;  %v687_v27 = vor.u32 %v686_v56, %v685_v61 }
  0xc0   :  { %v3056_v50 = vshrl.u32 %v879_v24, 30  ;;  %v945_v32 = vshrl.u32 %v3901_v0, %v936_v55  ;;  %v947_v22 = vshll.u32 %v3901_v0, %v935_v16  ;;  %v691_v25 = vor.u32 4788187, %v690_v38 }
  0xc1   :  { %v2369_v48 = vadd.s32 4294967294, %v783_v43  ;;  %v1027_v41 = vand.u32 2139095040, %v2897_v21  ;;  %vm477_vm5 = vcmp.eq.f32.partialorder %v2900_v31, 0.0  ;;  %vm484_vm6 = vcmp.eq.f32.partialorder %v2902_v30, 0.0 }
  0xc2   :  { %v881_v14 = vshll.u32 %v3056_v50, 30  ;;  %v929_v15 = vor.u32 8388608, %v928_v28  ;;  %v937_v13 = vshrl.u32 %v3886_v62, %v936_v55  ;;  %v3902_v36 = vmov 920167782  }
  0xc3   :  { %v948_v24 = vshrl.u32 %v3902_v36, %v936_v55  ;;  %v940_v10 = vor.u32 %v939_v20, %v938_v23  ;;  %v943_v18 = vor.u32 %v942_v52, %v941_v54  ;;  %v950_v60 = vshll.u32 %v3902_v36, %v935_v16 }
  0xc4   :  { %v3903_v61 = vmov 1326507024   ;;  %vm489_vm7 = vcmp.eq.f32.partialorder %v2906_v35, inf  ;;  %v3070_v38 = vsub.s32 %v878_v17, %v881_v14  ;;  %v946_v43 = vor.u32 %v945_v32, %v944_v33 }
  0xc5   :  { %v951_v56 = vshrl.u32 %v3903_v61, %v936_v55  ;;  %v949_v49 = vor.u32 %v948_v24, %v947_v22  ;;  %vm953_vm8 = vcmp.lt.s32.totalorder %v3048_v7, 1  ;;  %vm511_vm9 = vcmp.lt.s32.totalorder %v2672_v34, 0 }
  0xc6   :  { %v592_v28 = vmul.f32 %v591_v12, %v589_v19  ;;  %vm2370_vm10 = vcmp.lt.s32.totalorder %v2369_v48, 0  ;;  %v1028_v11 = vshrl.u32 %v1027_v41, 23  ;;  %v884_v23 = vsub.s32 0, %v3070_v38 }
  0xc7   :  { %v952_v62 = vor.u32 %v951_v56, %v950_v60  ;;  %vm955_vm11 = vcmp.lt.s32.totalorder %v3048_v7, 3  ;;  %vm956_vm12 = vcmp.lt.s32.totalorder %v3048_v7, 4  ;;  %v969_v16 = vshll.u32 %v929_v15, 8 }
  0xc8   :  { %vm954_vm13 = vcmp.lt.s32.totalorder %v3048_v7, 2  ;;  %v958_v17 = vsel %vm956_vm12, %v946_v43, 2102212464  ;;  %v961_v55 = vsel %vm953_vm8, %v940_v10, %v943_v18  ;;  %v962_v20 = vsel %vm956_vm12, %v949_v49, 920167782 }
  0xc9   :  { %vm491_vm14 = vcmp.eq.f32.partialorder %v2906_v35, 0.0  ;;  %vm496_vm15 = vcmp.eq.f32.partialorder %v2917_v44, inf  ;;  %v692_v60 = vand.u32 2147483647, %v691_v25  ;;  %v694_v12 = vcvt.s32.f32 %v687_v27 }
  0xca   :  { %v957_v19 = vsel %vm953_vm8, %v937_v13, %v940_v10  ;;  %v965_v54 = vsel %vm953_vm8, %v943_v18, %v946_v43  ;;  %v3904_v52 = vand.u32 2147483647, %v2672_v34  ;;  %v959_v32 = vsel %vm955_vm11, %v943_v18, %v958_v17 }
  0xcb   :  { %v963_v22 = vsel %vm955_vm11, %v946_v43, %v962_v20  ;;  %v966_v25 = vsel %vm956_vm12, %v952_v62, 1326507024  ;;  %v2379_v27 = vadd.s32 4294967169, %v1028_v11  ;;  %vm614_vm1 = vcmp.lt.s32.totalorder %v2675_v59, 0 }
  0xcc   :  { %vm3088_vm0 = vcmp.le.f32.partialorder %v3904_v52, 0.7853982  ;;  %v786_v10 = vsel %vm2370_vm10, 0, %v2369_v48  ;;  %v2372_v41 = vmin.u32 %v884_v23, %v3070_v38  ;;  %v964_v14 = vsel %vm954_vm13, %v961_v55, %v963_v22 }
  0xcd   :  { %v967_v15 = vsel %vm955_vm11, %v949_v49, %v966_v25  ;;  %v593_v13 = vxor.u32 2147483648, %v592_v28  ;;  %v3105_v24 = vmul.u32.u64.low %v969_v16, %v964_v14  ;;  %v3106_v56 = vmul.u32.u64.high %v969_v16, %v964_v14, %v3105_v24 }
  0xce   :  { %v968_v18 = vsel %vm954_vm13, %v965_v54, %v967_v15  ;;  %v695_v62 = vmul.f32 %v694_v12, %v692_v60  ;;  %v960_v11 = vsel %vm954_vm13, %v957_v19, %v959_v32  ;;  %v3907_v23 = vand.u32 2147483648, %v2900_v31 }
  0xcf   :  { %v3111_v48 = vmul.u32.u64.low %v969_v16, %v968_v18  ;;  %v3112_v43 = vmul.u32.u64.high %v969_v16, %v968_v18, %v3111_v48  ;;  %v3909_v17 = vand.u32 2147483648, %v2902_v30  ;;  %v791_v20 = vsub.s32 4294967266, %v786_v10 }
  0xd0   :  { %v3119_v49 = vsel %vm477_vm5, %v3907_v23, %v3032_v3  ;;  %v1034_v7 = vadd.s32 1, %v2379_v27  ;;  %v495_v60 = vmul.f32 %v3054_v40, %v2917_v44  ;;  %v771_v12 = vadd.s32 %v2874_v42, %v2882_v2 }
  0xd1   :  { %3908 = vst [vmem:[#allocation10_spill] sm:$0xff] %v3119_v49  ;;  %v3126_v55 = vsel %vm484_vm6, %v3909_v17, %v3037_v63  ;;  %v787_v19 = vsub.s32 32, %v786_v10  ;;  %v886_v54 = vclz %v2372_v41  ;;  %v490_v31 = vsel %vm489_vm7, %v2906_v35, %v3040_v1 }
  0xd2   :  { %3910 = vst [vmem:[#allocation11_spill] sm:$0xff] %v3126_v55  ;;  %v976_v3 = vmul.u32 %v969_v16, %v960_v11  ;;  %v979_v30 = vadd.s32 1, %v3106_v56  ;;  %vm1035_vm2 = vcmp.gt.s32.totalorder %v1034_v7, 0  ;;  %v594_v63 = vsel %vm511_vm9, %v593_v13, %v592_v28 }
  0xd3   :  { %v3911_v40 = vsub.s32 4, %v2803_v57  ;;  %v696_v2 = vxor.u32 2147483648, %v695_v62  ;;  %v698_v52 = vsub.s32 4, %v2835_v58  ;;  %v788_v32 = vshll.u32 %v2980_v39, %v786_v10 }
  0xd4   :  { %v792_v22 = vadd.s32 127, %v791_v20  ;;  %vm978_vm3 = vc.u32 %v3112_v43, %v3105_v24  ;;  %v1036_v1 = vsel %vm1035_vm2, %v1034_v7, 0  ;;  %v789_v16 = vshrl.u32 %v771_v12, %v787_v19 }
  0xd5   :  { %v596_v42 = vsel %vm511_vm9, %v3911_v40, %v2803_v57  ;;  %v2373_v25 = vadd.s32 4294967294, %v886_v54  ;;  %v980_v28 = vsel %vm978_vm3, %v979_v30, %v3106_v56  ;;  %v3889_v27 = vand.u32 2147483647, %v2897_v21 }
  0xd6   :  { %v3912_v41 = vand.u32 2147483648, %v2906_v35  ;;  %v3159_v39 = vsel %vm496_vm15, %v2917_v44, %v495_v60  ;;  %v981_v10 = vadd.s32 %v980_v28, %v976_v3  ;;  %v1038_v14 = vand.u32 31, %v1036_v1 }
  0xd7   :  { %v3164_v15 = vsel %vm3088_vm0, %v2672_v34, %v594_v63  ;;  %v3168_v13 = vsel %vm3088_vm0, 0, %v596_v42  ;;  %v3173_v35 = vsel %vm614_vm1, %v698_v52, %v2835_v58  ;;  %v3178_v56 = vsel %vm614_vm1, %v696_v2, %v695_v62 }
  0xd8   :  { %v3154_v57 = vsel %vm491_vm14, %v3912_v41, %v490_v31  ;;  %v793_v11 = vshll.u32 %v792_v22, 23  ;;  %v982_v48 = vadd.s32 536870912, %v981_v10  ;;  %v1039_v23 = vsub.s32 32, %v1038_v14 }
  0xd9   :  { %3913 = vst [vmem:[#allocation12_spill] sm:$0xff] %v3154_v57  ;;  %v3180_v17 = vor.u32 %v789_v16, %v788_v32  ;;  %vm2374_vm4 = vcmp.lt.s32.totalorder %v2373_v25, 0  ;;  %v1031_v33 = vand.u32 8388607, %v3889_v27  ;;  %v3914_v20 = vmov 683565275  }
  0xda   :  { %v1041_v7 = vshll.u32 %v3914_v20, %v1038_v14  ;;  %v3185_v60 = vshrl.u32 %v982_v48, 30  ;;  %v3915_v58 = vmov 2475754826   ;;  %v1045_v62 = vshrl.u32 %v3900_v8, %v1039_v23 }
  0xdb   :  { %v1042_v12 = vshrl.u32 %v3915_v58, %v1039_v23  ;;  %v1044_v19 = vshll.u32 %v3915_v58, %v1038_v14  ;;  %v874_v54 = vadd.s32 %v3000_v9, %v2996_v47  ;;  %v1037_v31 = vshrl.u32 %v1036_v1, 5 }
  0xdc   :  { %v1050_v3 = vshll.u32 %v3901_v0, %v1038_v14  ;;  %v1130_v30 = vand.u32 2139095040, %v2904_v51  ;;  %v3194_v63 = vor.u32 4788187, %v793_v11  ;;  %v984_v40 = vshll.u32 %v3185_v60, 30 }
  0xdd   :  { %v1047_v42 = vshll.u32 %v3900_v8, %v1038_v14  ;;  %v1048_v2 = vshrl.u32 %v3901_v0, %v1039_v23  ;;  %v3199_v52 = vsel %vm2374_vm4, 0, %v2373_v25  ;;  %v1032_v32 = vor.u32 8388608, %v1031_v33 }
  0xde   :  { %v1051_v22 = vshrl.u32 %v3902_v36, %v1039_v23  ;;  %v1053_v47 = vshll.u32 %v3902_v36, %v1038_v14  ;;  %vm498_vm5 = vcmp.eq.f32.partialorder %v2917_v44, 0.0  ;;  %v3204_v9 = vsub.s32 %v981_v10, %v984_v40 }
  0xdf   :  { %v1043_v1 = vor.u32 %v1042_v12, %v1041_v7  ;;  %v1046_v16 = vor.u32 %v1045_v62, %v1044_v19  ;;  %v1054_v28 = vshrl.u32 %v3903_v61, %v1039_v23  ;;  %v797_v41 = vcvt.s32.f32 %v3180_v17 }
  0xe0   :  { %v1052_v11 = vor.u32 %v1051_v22, %v1050_v3  ;;  %vm1056_vm6 = vcmp.lt.s32.totalorder %v1037_v31, 1  ;;  %v1131_v48 = vshrl.u32 %v1130_v30, 23  ;;  %v3916_v25 = vand.u32 2147483647, %v2675_v59 }
  0xe1   :  { %v795_v14 = vand.u32 2147483647, %v3194_v63  ;;  %v987_v10 = vsub.s32 0, %v3204_v9  ;;  %v1040_v7 = vshrl.u32 %v3914_v20, %v1039_v23  ;;  %v1049_v12 = vor.u32 %v1048_v2, %v1047_v42 }
  0xe2   :  { %vm3210_vm7 = vcmp.le.f32.partialorder %v3916_v25, 0.7853982  ;;  %v894_v19 = vsub.s32 4294967266, %v3199_v52  ;;  %v1055_v62 = vor.u32 %v1054_v28, %v1053_v47  ;;  %vm1058_vm8 = vcmp.lt.s32.totalorder %v1037_v31, 3 }
  0xe3   :  { %vm1059_vm9 = vcmp.lt.s32.totalorder %v1037_v31, 4  ;;  %vm717_vm10 = vcmp.lt.s32.totalorder %v2708_v6, 0  ;;  %v2376_v17 = vmin.u32 %v987_v10, %v3204_v9  ;;  %vm1057_vm11 = vcmp.lt.s32.totalorder %v1037_v31, 2 }
  0xe4   :  { %v1064_v3 = vsel %vm1056_vm6, %v1043_v1, %v1046_v16  ;;  %v1072_v30 = vshll.u32 %v1032_v32, 8  ;;  %v890_v63 = vsub.s32 32, %v3199_v52  ;;  %v1061_v40 = vsel %vm1059_vm9, %v1049_v12, 2102212464 }
  0xe5   :  { %v1065_v23 = vsel %vm1059_vm9, %v1052_v11, 920167782  ;;  %v2383_v42 = vadd.s32 4294967169, %v1131_v48  ;;  %v989_v2 = vclz %v2376_v17  ;;  %v1060_v22 = vsel %vm1056_vm6, %v1040_v7, %v1043_v1 }
  0xe6   :  { %v1062_v47 = vsel %vm1058_vm8, %v1046_v16, %v1061_v40  ;;  %v1066_v28 = vsel %vm1058_vm8, %v1049_v12, %v1065_v23  ;;  %v895_v25 = vadd.s32 127, %v894_v19  ;;  %v1068_v27 = vsel %vm1056_vm6, %v1046_v16, %v1049_v12 }
  0xe7   :  { %v1067_v10 = vsel %vm1057_vm11, %v1064_v3, %v1066_v28  ;;  %v1069_v32 = vsel %vm1059_vm9, %v1055_v62, 1326507024  ;;  %v3919_v18 = vand.u32 2147483647, %v2708_v6  ;;  %v2377_v48 = vadd.s32 4294967294, %v989_v2 }
  0xe8   :  { %v1070_v1 = vsel %vm1058_vm8, %v1052_v11, %v1069_v32  ;;  %v3237_v7 = vmul.u32.u64.low %v1072_v30, %v1067_v10  ;;  %v3238_v17 = vmul.u32.u64.high %v1072_v30, %v1067_v10, %v3237_v7  ;;  %v891_v19 = vshll.u32 %v3070_v38, %v3199_v52 }
  0xe9   :  { %vm3232_vm12 = vcmp.le.f32.partialorder %v3919_v18, 0.7853982  ;;  %v1063_v16 = vsel %vm1057_vm11, %v1060_v22, %v1062_v47  ;;  %v1071_v12 = vsel %vm1057_vm11, %v1068_v27, %v1070_v1  ;;  %v1137_v62 = vadd.s32 1, %v2383_v42 }
  0xea   :  { %v892_v3 = vshrl.u32 %v874_v54, %v890_v63  ;;  %vm2378_vm13 = vcmp.lt.s32.totalorder %v2377_v48, 0  ;;  %v3245_v18 = vmul.u32.u64.low %v1072_v30, %v1071_v12  ;;  %v3246_v40 = vmul.u32.u64.high %v1072_v30, %v1071_v12, %v3245_v18 }
  0xeb   :  { %v3922_v11 = vand.u32 2147483648, %v2917_v44  ;;  %v3256_v2 = vand.u32 3, %v3168_v13  ;;  %v896_v38 = vshll.u32 %v895_v25, 23  ;;  %vm1138_vm14 = vcmp.gt.s32.totalorder %v1137_v62, 0 }
  0xec   :  { %v3261_v27 = vsel %vm3210_vm7, 0, %v3173_v35  ;;  %v992_v54 = vsel %vm2378_vm13, 0, %v2377_v48  ;;  %v1079_v31 = vmul.u32 %v1072_v30, %v1063_v16  ;;  %v1082_v52 = vadd.s32 1, %v3238_v17 }
  0xed   :  { %v3253_v23 = vsel %vm498_vm5, %v3922_v11, %v3159_v39  ;;  %2516 = vcosq.f32 %v3164_v15  ;;  %v3269_v44 = vsel %vm3210_vm7, %v2675_v59, %v3178_v56  ;;  %v3924_v39 = vsub.s32 4, %v2953_v37 }
  0xee   :  { %3923 = vst [vmem:[#allocation13_spill] sm:$0xff] %v3253_v23  ;;  %v1139_v35 = vsel %vm1138_vm14, %v1137_v62, 0  ;;  %v798_v42 = vmul.f32 %v797_v41, %v795_v14  ;;  %v893_v22 = vor.u32 %v892_v3, %v891_v19  ;;  %vm1081_vm15 = vc.u32 %v3246_v40, %v3237_v7 }
  0xef   :  { %v802_v63 = vsel %vm717_vm10, %v3924_v39, %v2953_v37  ;;  %v3891_v30 = vand.u32 2147483647, %v2904_v51  ;;  %v897_v47 = vor.u32 4788187, %v896_v38  ;;  %v997_v28 = vsub.s32 4294967266, %v992_v54 }
  0xf0   :  { %v1083_v33 = vsel %vm1081_vm15, %v1082_v52, %v3238_v17  ;;  %v1141_v56 = vand.u32 31, %v1139_v35  ;;  %2518 = vsinq.f32 %v3164_v15  ;;  %v977_v25 = vadd.s32 %v3105_v24, %v3112_v43 }
  0xf1   :  { %v993_v10 = vsub.s32 32, %v992_v54  ;;  %v1084_v37 = vadd.s32 %v1083_v33, %v1079_v31  ;;  %2520 = vcosq.f32 %v3269_v44  ;;  %v3285_v41 = vand.u32 3, %v3261_v27 }
  0xf2   :  { %v3289_v14 = vsel %vm3232_vm12, 0, %v802_v63  ;;  %v1142_v32 = vsub.s32 32, %v1141_v56  ;;  %v799_v48 = vxor.u32 2147483648, %v798_v42  ;;  %v900_v1 = vcvt.s32.f32 %v893_v22 }
  0xf3   :  { %v1085_v17 = vadd.s32 536870912, %v1084_v37  ;;  %v1134_v15 = vand.u32 8388607, %v3891_v30  ;;  %v898_v19 = vand.u32 2147483647, %v897_v47  ;;  %v994_v24 = vshll.u32 %v3204_v9, %v992_v54 }
  0xf4   :  { %v998_v43 = vadd.s32 127, %v997_v28  ;;  %v1233_v16 = vand.u32 2139095040, %v2920_v46  ;;  %v995_v12 = vshrl.u32 %v977_v25, %v993_v10  ;;  %v1140_v3 = vshrl.u32 %v1139_v35, 5 }
  0xf5   :  { %v3295_v62 = vshrl.u32 %v1085_v17, 30  ;;  %v1144_v18 = vshll.u32 %v3914_v20, %v1141_v56  ;;  %v1145_v11 = vshrl.u32 %v3915_v58, %v1142_v32  ;;  %v1147_v38 = vshll.u32 %v3915_v58, %v1141_v56 }
  0xf6   :  { %v1148_v31 = vshrl.u32 %v3900_v8, %v1142_v32  ;;  %v1150_v52 = vshll.u32 %v3900_v8, %v1141_v56  ;;  %v1151_v9 = vshrl.u32 %v3901_v0, %v1142_v32  ;;  %v1153_v54 = vshll.u32 %v3901_v0, %v1141_v56 }
  0xf7   :  { %v1087_v39 = vshll.u32 %v3295_v62, 30  ;;  %v1154_v63 = vshrl.u32 %v3902_v36, %v1142_v32  ;;  %v800_v35 = vsel %vm717_vm10, %v799_v48, %v798_v42  ;;  %v999_v22 = vshll.u32 %v998_v43, 23 }
  0xf8   :  { %v1156_v47 = vshll.u32 %v3902_v36, %v1141_v56  ;;  %v1234_v28 = vshrl.u32 %v1233_v16, 23  ;;  %v3309_v33 = vmul.f32 %v900_v1, %v898_v19  ;;  %v996_v25 = vor.u32 %v995_v12, %v994_v24 }
  0xf9   :  { %v3311_v10 = vsub.s32 %v1084_v37, %v1087_v39  ;;  %v1135_v17 = vor.u32 8388608, %v1134_v15  ;;  %v1143_v30 = vshrl.u32 %v3914_v20, %v1142_v32  ;;  %v1146_v23 = vor.u32 %v1145_v11, %v1144_v18 }
  0xfa   :  { %v1149_v55 = vor.u32 %v1148_v31, %v1147_v38  ;;  %v1157_v49 = vshrl.u32 %v3903_v61, %v1142_v32  ;;  %v3315_v5 = vpop.eup %2516  ;;  %v1152_v48 = vor.u32 %v1151_v9, %v1150_v52  ;;  %v1155_v43 = vor.u32 %v1154_v63, %v1153_v54 }
  0xfb   :  { %v1090_v42 = vsub.s32 0, %v3311_v10  ;;  %vm1159_vm0 = vcmp.lt.s32.totalorder %v1140_v3, 1  ;;  %v1000_v56 = vor.u32 4788187, %v999_v22  ;;  %vm1162_vm1 = vcmp.lt.s32.totalorder %v1140_v3, 4 }
  0xfc   :  { %v1158_v1 = vor.u32 %v1157_v49, %v1156_v47  ;;  %v2387_v19 = vadd.s32 4294967169, %v1234_v28  ;;  %vm820_vm2 = vcmp.lt.s32.totalorder %v2827_v26, 0  ;;  %v1003_v37 = vcvt.s32.f32 %v996_v25 }
  0xfd   :  { %v2380_v15 = vmin.u32 %v1090_v42, %v3311_v10  ;;  %vm1161_vm3 = vcmp.lt.s32.totalorder %v1140_v3, 3  ;;  %v1175_v24 = vshll.u32 %v1135_v17, 8  ;;  %v3320_v16 = vpop.eup %2518  ;;  %vm1160_vm4 = vcmp.lt.s32.totalorder %v1140_v3, 2 }
  0xfe   :  { %v1163_v32 = vsel %vm1159_vm0, %v1143_v30, %v1146_v23  ;;  %v1164_v12 = vsel %vm1162_vm1, %v1152_v48, 2102212464  ;;  %v1167_v18 = vsel %vm1159_vm0, %v1146_v23, %v1149_v55  ;;  %v3325_v11 = vpop.eup %2520  ;;  %v1168_v31 = vsel %vm1162_vm1, %v1155_v43, 920167782 }
  0xff   :  { %v1092_v49 = vclz %v2380_v15  ;;  %v1165_v38 = vsel %vm1161_vm3, %v1149_v55, %v1164_v12  ;;  %v1171_v52 = vsel %vm1159_vm0, %v1149_v55, %v1152_v48  ;;  %v1001_v39 = vand.u32 2147483647, %v1000_v56 }
 0x100   :  { %v1169_v9 = vsel %vm1161_vm3, %v1152_v48, %v1168_v31  ;;  %v1172_v54 = vsel %vm1162_vm1, %v1158_v1, 1326507024  ;;  %v1240_v63 = vadd.s32 1, %v2387_v19  ;;  %v1166_v22 = vsel %vm1160_vm4, %v1163_v32, %v1165_v38 }
 0x101   :  { %v2381_v30 = vadd.s32 4294967294, %v1092_v49  ;;  %v1170_v23 = vsel %vm1160_vm4, %v1167_v18, %v1169_v9  ;;  %v1173_v47 = vsel %vm1161_vm3, %v1155_v43, %v1172_v54  ;;  %v3925_v28 = vand.u32 2147483647, %v2827_v26 }
 0x102   :  { %v1174_v55 = vsel %vm1160_vm4, %v1171_v52, %v1173_v47  ;;  %v3342_v17 = vmul.u32.u64.low %v1175_v24, %v1170_v23  ;;  %v3343_v42 = vmul.u32.u64.high %v1175_v24, %v1170_v23, %v3342_v17  ;;  %vm1241_vm6 = vcmp.gt.s32.totalorder %v1240_v63, 0 }
 0x103   :  { %vm3337_vm5 = vcmp.le.f32.partialorder %v3925_v28, 0.7853982  ;;  %vm923_vm7 = vcmp.lt.s32.totalorder %v2862_v29, 0  ;;  %vm2382_vm8 = vcmp.lt.s32.totalorder %v2381_v30, 0  ;;  %v1242_v43 = vsel %vm1241_vm6, %v1240_v63, 0 }
 0x104   :  { %v3347_v48 = vmul.u32.u64.low %v1175_v24, %v1174_v55  ;;  %v3348_v56 = vmul.u32.u64.high %v1175_v24, %v1174_v55, %v3347_v48  ;;  %v803_v1 = vsel %vm3232_vm12, %v2708_v6, %v800_v35  ;;  %v902_v19 = vxor.u32 2147483648, %v3309_v33 }
 0x105   :  { %v1095_v3 = vsel %vm2382_vm8, 0, %v2381_v30  ;;  %v1244_v15 = vand.u32 31, %v1242_v43  ;;  %v1004_v32 = vmul.f32 %v1003_v37, %v1001_v39  ;;  %v1182_v18 = vmul.u32 %v1175_v24, %v1166_v22 }
 0x106   :  { %v1100_v12 = vsub.s32 4294967266, %v1095_v3  ;;  %v1230_v49 = vand.u32 2147483647, %v2920_v46  ;;  %v608_v38 = vxor.u32 2147483648, %v3315_v5  ;;  %2522 = vsinq.f32 %v3269_v44 }
 0x107   :  { %v3358_v31 = vand.u32 3, %v3289_v14  ;;  %v3928_v52 = vand.u32 2147483647, %v2862_v29  ;;  %v1185_v35 = vadd.s32 1, %v3343_v42  ;;  %v1080_v37 = vadd.s32 %v3237_v7, %v3246_v40 }
 0x108   :  { %v1096_v24 = vsub.s32 32, %v1095_v3  ;;  %vm1184_vm10 = vc.u32 %v3348_v56, %v3342_v17  ;;  %v1245_v39 = vsub.s32 32, %v1244_v15  ;;  %2524 = vcosq.f32 %v803_v1 }
 0x109   :  { %vm3362_vm9 = vcmp.le.f32.partialorder %v3928_v52, 0.7853982  ;;  %v903_v44 = vsel %vm820_vm2, %v902_v19, %v3309_v33  ;;  %v1101_v9 = vadd.s32 127, %v1100_v12  ;;  %v1186_v54 = vsel %vm1184_vm10, %v1185_v35, %v3343_v42 }
 0x10a   :  { %v1005_v63 = vxor.u32 2147483648, %v1004_v32  ;;  %v1187_v30 = vadd.s32 %v1186_v54, %v1182_v18  ;;  %v1237_v22 = vand.u32 8388607, %v1230_v49  ;;  %v3377_v23 = vshrl.u32 %v1242_v43, 5 }
 0x10b   :  { %v1097_v7 = vshll.u32 %v3311_v10, %v1095_v3  ;;  %v1247_v40 = vshll.u32 %v3914_v20, %v1244_v15  ;;  %v1250_v47 = vshll.u32 %v3915_v58, %v1244_v15  ;;  %v1256_v28 = vshll.u32 %v3901_v0, %v1244_v15 }
 0x10c   :  { %v1098_v55 = vshrl.u32 %v1080_v37, %v1096_v24  ;;  %v1188_v33 = vadd.s32 536870912, %v1187_v30  ;;  %v1248_v48 = vshrl.u32 %v3915_v58, %v1245_v39  ;;  %v1251_v42 = vshrl.u32 %v3900_v8, %v1245_v39 }
 0x10d   :  { %v1102_v19 = vshll.u32 %v1101_v9, 23  ;;  %v1253_v12 = vshll.u32 %v3900_v8, %v1244_v15  ;;  %v1254_v43 = vshrl.u32 %v3901_v0, %v1245_v39  ;;  %v1257_v18 = vshrl.u32 %v3902_v36, %v1245_v39 }
 0x10e   :  { %2526 = vsinq.f32 %v803_v1  ;;  %v906_v10 = vsel %vm3337_vm5, %v2827_v26, %v903_v44  ;;  %v3391_v3 = vshrl.u32 %v1188_v33, 30  ;;  %v1238_v52 = vor.u32 8388608, %v1237_v22 }
 0x10f   :  { %v1006_v58 = vsel %vm923_vm7, %v1005_v63, %v1004_v32  ;;  %v1258_v35 = vor.u32 %v1257_v18, %v1256_v28  ;;  %v1259_v37 = vshll.u32 %v3902_v36, %v1244_v15  ;;  %v1260_v8 = vshrl.u32 %v3903_v61, %v1245_v39 }
 0x110   :  { %vm604_vm11 = vcmp.eq.s32.totalorder %v3256_v2, 0  ;;  %vm607_vm12 = vcmp.eq.s32.totalorder %v3256_v2, 2  ;;  %v1099_v0 = vor.u32 %v1098_v55, %v1097_v7  ;;  %v1190_v1 = vshll.u32 %v3391_v3, 30 }
 0x111   :  { %v1249_v24 = vor.u32 %v1248_v48, %v1247_v40  ;;  %v1252_v44 = vor.u32 %v1251_v42, %v1250_v47  ;;  %v1103_v9 = vor.u32 4788187, %v1102_v19  ;;  %v1255_v54 = vor.u32 %v1254_v43, %v1253_v12 }
 0x112   :  { %vm1262_vm13 = vcmp.lt.s32.totalorder %v3377_v23, 1  ;;  %vm1265_vm14 = vcmp.lt.s32.totalorder %v3377_v23, 4  ;;  %2528 = vcosq.f32 %v906_v10  ;;  %v1009_v36 = vsel %vm3362_vm9, %v2862_v29, %v1006_v58 }
 0x113   :  { %v3405_v61 = vsub.s32 %v1187_v30, %v1190_v1  ;;  %vm1264_vm15 = vcmp.lt.s32.totalorder %v3377_v23, 3  ;;  %v1246_v15 = vshrl.u32 %v3914_v20, %v1245_v39  ;;  %v1261_v32 = vor.u32 %v1260_v8, %v1259_v37  ;;  %v3413_v7 = vpop.eup %2522 }
 0x114   :  { %v1271_v63 = vsel %vm1265_vm14, %v1258_v35, 920167782  ;;  %v3411_v22 = vshll.u32 %v1238_v52, 8  ;;  %vm707_vm0 = vcmp.eq.s32.totalorder %v3285_v41, 0  ;;  %vm710_vm1 = vcmp.eq.s32.totalorder %v3285_v41, 2 }
 0x115   :  { %v1193_v40 = vsub.s32 0, %v3405_v61  ;;  %vm1263_vm3 = vcmp.lt.s32.totalorder %v3377_v23, 2  ;;  %v1267_v30 = vsel %vm1265_vm14, %v1255_v54, 2102212464  ;;  %v1270_v20 = vsel %vm1262_vm13, %v1249_v24, %v1252_v44  ;;  %v3425_v55 = vpop.eup %2524 }
 0x116   :  { %2530 = vsinq.f32 %v906_v10  ;;  %v1104_v39 = vand.u32 2147483647, %v1103_v9  ;;  %v1106_v47 = vcvt.s32.f32 %v1099_v0  ;;  %v1272_v28 = vsel %vm1264_vm15, %v1255_v54, %v1271_v63 }
 0x117   :  { %v904_v33 = vsub.s32 4, %v3056_v50  ;;  %2532 = vcosq.f32 %v1009_v36  ;;  %v2384_v48 = vmin.u32 %v1193_v40, %v3405_v61  ;;  %v1274_v42 = vsel %vm1262_vm13, %v1252_v44, %v1255_v54 }
 0x118   :  { %v1266_v19 = vsel %vm1262_vm13, %v1246_v15, %v1249_v24  ;;  %v1268_v12 = vsel %vm1264_vm15, %v1252_v44, %v1267_v30  ;;  %v1273_v43 = vsel %vm1263_vm3, %v1270_v20, %v1272_v28  ;;  %v1275_v18 = vsel %vm1265_vm14, %v1261_v32, 1326507024 }
 0x119   :  { %vm603_vm4 = vcmp.lt.s32.totalorder %v3256_v2, 2  ;;  %vm706_vm6 = vcmp.lt.s32.totalorder %v3285_v41, 2  ;;  %v1195_v10 = vclz %v2384_v48  ;;  %v1276_v52 = vsel %vm1264_vm15, %v1258_v35, %v1275_v18 }
 0x11a   :  { %v3444_v58 = vmul.u32.u64.low %v3411_v22, %v1273_v43  ;;  %v3445_v37 = vmul.u32.u64.high %v3411_v22, %v1273_v43, %v3444_v58  ;;  %v605_v8 = vxor.u32 2147483648, %v3320_v16  ;;  %2534 = vsinq.f32 %v1009_v36 }
 0x11b   :  { %v1107_v0 = vmul.f32 %v1106_v47, %v1104_v39  ;;  %v1277_v1 = vsel %vm1263_vm3, %v1274_v42, %v1276_v52  ;;  %v2385_v24 = vadd.s32 4294967294, %v1195_v10  ;;  %v1269_v44 = vsel %vm1263_vm3, %v1266_v19, %v1268_v12  ;;  %v3457_v35 = vpop.eup %2526 }
 0x11c   :  { %v3454_v9 = vmul.u32.u64.low %v3411_v22, %v1277_v1  ;;  %v3455_v54 = vmul.u32.u64.high %v3411_v22, %v1277_v1, %v3454_v9  ;;  %v606_v36 = vsel %vm604_vm11, %v3315_v5, %v605_v8  ;;  %v609_v15 = vsel %vm607_vm12, %v608_v38, %v3320_v16 }
 0x11d   :  { %v711_v23 = vxor.u32 2147483648, %v3325_v11  ;;  %v905_v32 = vsel %vm820_vm2, %v904_v33, %v3056_v50  ;;  %v1007_v63 = vsub.s32 4, %v3185_v60  ;;  %v1183_v40 = vadd.s32 %v3342_v17, %v3348_v56 }
 0x11e   :  { %vm2386_vm8 = vcmp.lt.s32.totalorder %v2385_v24, 0  ;;  %v1288_v30 = vadd.s32 1, %v3445_v37  ;;  %v708_v20 = vxor.u32 2147483648, %v3413_v7  ;;  %v1108_v39 = vxor.u32 2147483648, %v1107_v0 }
 0x11f   :  { %v1198_v47 = vsel %vm2386_vm8, 0, %v2385_v24  ;;  %v1285_v28 = vmul.u32 %v3411_v22, %v1269_v44  ;;  %vm1026_vm10 = vcmp.lt.s32.totalorder %v2897_v21, 0  ;;  %v3481_v33 = vpop.eup %2528  ;;  %v712_v56 = vsel %vm710_vm1, %v711_v23, %v3413_v7 }
 0x120   :  { %v1199_v48 = vsub.s32 32, %v1198_v47  ;;  %v1200_v42 = vshll.u32 %v3405_v61, %v1198_v47  ;;  %v1203_v50 = vsub.s32 4294967266, %v1198_v47  ;;  %v709_v17 = vsel %vm707_vm0, %v3325_v11, %v708_v20 }
 0x121   :  { %v3495_v22 = vsel %vm3337_vm5, 0, %v905_v32  ;;  %vm1287_vm2 = vc.u32 %v3455_v54, %v3444_v58  ;;  %v1008_v61 = vsel %vm923_vm7, %v1007_v63, %v3185_v60  ;;  %v3931_v10 = vand.u32 2147483647, %v2897_v21 }
 0x122   :  { %v1201_v19 = vshrl.u32 %v1183_v40, %v1199_v48  ;;  %v1204_v12 = vadd.s32 127, %v1203_v50  ;;  %v1289_v43 = vsel %vm1287_vm2, %v1288_v30, %v3445_v37  ;;  %v3504_v18 = vand.u32 3, %v3495_v22 }
 0x123   :  { %vm3508_vm11 = vcmp.le.f32.partialorder %v3931_v10, 0.7853982  ;;  %v1109_v52 = vsel %vm1026_vm10, %v1108_v39, %v1107_v0  ;;  %v1290_v1 = vadd.s32 %v1289_v43, %v1285_v28  ;;  %v3514_v24 = vpop.eup %2530  ;;  %vm809_vm5 = vcmp.lt.s32.totalorder %v3358_v31, 2 }
 0x124   :  { %vm810_vm7 = vcmp.eq.s32.totalorder %v3358_v31, 0  ;;  %vm813_vm12 = vcmp.eq.s32.totalorder %v3358_v31, 2  ;;  %v1202_v60 = vor.u32 %v1201_v19, %v1200_v42  ;;  %v1205_v37 = vshll.u32 %v1204_v12, 23  ;;  %v3519_v44 = vpop.eup %2532 }
 0x125   :  { %v610_v9 = vsel %vm603_vm4, %v606_v36, %v609_v15  ;;  %v713_v32 = vsel %vm706_vm6, %v709_v17, %v712_v56  ;;  %v3527_v0 = vsel %vm3362_vm9, 0, %v1008_v61  ;;  %v1291_v63 = vadd.s32 536870912, %v1290_v1 }
 0x126   :  { %v1014_v40 = vand.u32 3, %v3527_v0  ;;  %v1110_v30 = vsub.s32 4, %v3295_v62  ;;  %v1112_v39 = vsel %vm3508_vm11, %v2897_v21, %v1109_v52  ;;  %v1206_v47 = vor.u32 4788187, %v1205_v37 }
 0x127   :  { %vm601_vm13 = vweird.f32 %v2672_v34  ;;  %v811_v2 = vxor.u32 2147483648, %v3457_v35  ;;  %v814_v41 = vxor.u32 2147483648, %v3425_v55  ;;  %vm912_vm14 = vcmp.lt.s32.totalorder %v3504_v18, 2  ;;  %v3540_v36 = vpop.eup %2534 }
 0x128   :  { %v3538_v57 = vshrl.u32 %v1291_v63, 30  ;;  %vm704_vm9 = vweird.f32 %v2675_v59  ;;  %vm913_vm15 = vcmp.eq.s32.totalorder %v3504_v18, 0  ;;  %vm916_vm0 = vcmp.eq.s32.totalorder %v3504_v18, 2 }
 0x129   :  { %v1207_v15 = vand.u32 2147483647, %v1206_v47  ;;  %v1209_v28 = vcvt.s32.f32 %v1202_v60  ;;  %vm807_vm1 = vweird.f32 %v2708_v6  ;;  %v812_v48 = vsel %vm810_vm7, %v3425_v55, %v811_v2 }
 0x12a   :  { %v815_v42 = vsel %vm813_vm12, %v814_v41, %v3457_v35  ;;  %2536 = vcosq.f32 %v1112_v39  ;;  %v1293_v50 = vshll.u32 %v3538_v57, 30  ;;  %vm910_vm3 = vweird.f32 %v2827_v26 }
 0x12b   :  { %v917_v17 = vxor.u32 2147483648, %v3481_v33  ;;  %vm1015_vm4 = vcmp.lt.s32.totalorder %v1014_v40, 2  ;;  %v1111_v56 = vsel %vm1026_vm10, %v1110_v30, %v3295_v62  ;;  %2538 = vsinq.f32 %v1112_v39 }
 0x12c   :  { %v914_v61 = vxor.u32 2147483648, %v3514_v24  ;;  %vm1016_vm6 = vcmp.eq.s32.totalorder %v1014_v40, 0  ;;  %vm1019_vm8 = vcmp.eq.s32.totalorder %v1014_v40, 2  ;;  %v3563_v19 = vsub.s32 %v1290_v1, %v1293_v50 }
 0x12d   :  { %v918_v12 = vsel %vm916_vm0, %v917_v17, %v3514_v24  ;;  %v1017_v43 = vxor.u32 2147483648, %v3540_v36  ;;  %v3897_v10 = vxor.u32 2147483648, %v3519_v44  ;;  %v1210_v52 = vmul.f32 %v1209_v28, %v1207_v15 }
 0x12e   :  { %v915_v62 = vsel %vm913_vm15, %v3481_v33, %v914_v61  ;;  %v3579_v1 = vsel %vm3508_vm11, 0, %v1111_v56  ;;  %v1296_v60 = vsub.s32 0, %v3563_v19  ;;  %v1434_v37 = vadd.s32 3, %v3168_v13 }
 0x12f   :  { %v1018_v63 = vsel %vm1016_vm6, %v3519_v44, %v1017_v43  ;;  %v1021_v30 = vsel %vm1019_vm8, %v3897_v10, %v3540_v36  ;;  %v1213_v39 = vsub.s32 4, %v3391_v3  ;;  %v1538_v47 = vadd.s32 3, %v3261_v27 }
 0x130   :  { %v816_v25 = vsel %vm809_vm5, %v812_v48, %v815_v42  ;;  %vm1013_vm10 = vweird.f32 %v2862_v29  ;;  %v3595_v15 = vand.u32 3, %v3579_v1  ;;  %v2388_v13 = vmin.u32 %v1296_v60, %v3563_v19 }
 0x131   :  { %v611_v28 = vsel %vm601_vm13, nan, %v610_v9  ;;  %v919_v50 = vsel %vm912_vm14, %v915_v62, %v918_v12  ;;  %vm1129_vm2 = vcmp.lt.s32.totalorder %v2904_v51, 0  ;;  %v1211_v56 = vxor.u32 2147483648, %v1210_v52 }
 0x132   :  { %v714_v27 = vsel %vm704_vm9, nan, %v713_v32  ;;  %v1022_v31 = vsel %vm1015_vm4, %v1018_v63, %v1021_v30  ;;  %v1298_v48 = vclz %v2388_v13  ;;  %v1435_v42 = vand.u32 3, %v1434_v37 }
 0x133   :  { %v817_v10 = vsel %vm807_vm1, nan, %v816_v25  ;;  %v3934_v60 = vand.u32 2147483647, %v2904_v51  ;;  %v1214_v18 = vsel %vm1129_vm2, %v1213_v39, %v3391_v3  ;;  %v3615_v12 = vand.u32 3, %v1538_v47 }
 0x134   :  { %v3619_v32 = vsel %vm910_vm3, nan, %v919_v50  ;;  %vm1119_vm5 = vcmp.eq.s32.totalorder %v3595_v15, 0  ;;  %vm1122_vm7 = vcmp.eq.s32.totalorder %v3595_v15, 2  ;;  %v2389_v40 = vadd.s32 4294967294, %v1298_v48 }
 0x135   :  { %vm3610_vm11 = vcmp.le.f32.partialorder %v3934_v60, 0.7853982  ;;  %v3625_v62 = vsel %vm1013_vm10, nan, %v1022_v31  ;;  %v1212_v37 = vsel %vm1129_vm2, %v1211_v56, %v1210_v52  ;;  %v3628_v63 = vmul.f32 %v611_v28, %v2925_v53 }
 0x136   :  { %v1642_v3 = vadd.s32 3, %v3289_v14  ;;  %vm1118_vm12 = vcmp.lt.s32.totalorder %v3595_v15, 2  ;;  %v3634_v30 = vsel %vm3610_vm11, 0, %v1214_v18  ;;  %v1286_v39 = vadd.s32 %v3444_v58, %v3455_v54  ;;  %v3939_v15 = vld [vmem:[#allocation8_spill] sm:$0xff] }
 0x137   :  { %vm2390_vm14 = vcmp.lt.s32.totalorder %v2389_v40, 0  ;;  %vm1437_vm15 = vcmp.eq.s32.totalorder %v1435_v42, 0  ;;  %v3638_v47 = vpop.eup %2536  ;;  %vm1440_vm0 = vcmp.eq.s32.totalorder %v1435_v42, 2  ;;  %vm1541_vm4 = vcmp.eq.s32.totalorder %v3615_v12, 0 }
 0x138   :  { %v1301_v25 = vsel %vm2390_vm14, 0, %v2389_v40  ;;  %v1746_v52 = vadd.s32 3, %v3495_v22  ;;  %v3642_v14 = vpop.eup %2538  ;;  %v1215_v13 = vsel %vm3610_vm11, %v2904_v51, %v1212_v37  ;;  %vm1232_vm6 = vcmp.lt.s32.totalorder %v2920_v46, 0 }
 0x139   :  { %v1302_v28 = vsub.s32 32, %v1301_v25  ;;  %v1303_v50 = vshll.u32 %v3563_v19, %v1301_v25  ;;  %v1306_v58 = vsub.s32 4294967266, %v1301_v25  ;;  %vm1436_vm8 = vcmp.lt.s32.totalorder %v1435_v42, 2 }
 0x13a   :  { %v1439_v54 = vsel %vm1437_vm15, %v3315_v5, %v605_v8  ;;  %vm1544_vm2 = vcmp.eq.s32.totalorder %v3615_v12, 2  ;;  %v1643_v22 = vand.u32 3, %v1642_v3  ;;  %v1442_v48 = vsel %vm1440_vm0, %v608_v38, %v3320_v16 }
 0x13b   :  { %v1304_v56 = vshrl.u32 %v1286_v39, %v1302_v28  ;;  %v1307_v31 = vadd.s32 127, %v1306_v58  ;;  %vm1540_vm11 = vcmp.lt.s32.totalorder %v3615_v12, 2  ;;  %v1120_v19 = vxor.u32 2147483648, %v3642_v14  ;;  %v3940_v12 = vld [vmem:[#allocation9_spill] sm:$0xff] }
 0x13c   :  { %v1123_v60 = vxor.u32 2147483648, %v3638_v47  ;;  %2540 = vcosq.f32 %v1215_v13  ;;  %v1543_v8 = vsel %vm1541_vm4, %v3325_v11, %v708_v20  ;;  %vm1116_vm14 = vweird.f32 %v2897_v21 }
 0x13d   :  { %2542 = vsinq.f32 %v1215_v13  ;;  %vm3667_vm15 = vcmp.le.f32.partialorder %v1230_v49, 0.7853982  ;;  %v1305_v16 = vor.u32 %v1304_v56, %v1303_v50  ;;  %v1308_v38 = vshll.u32 %v1307_v31, 23  ;;  %v2189_v50 = vpop.permute.xlu0 %2188 }
 0x13e   :  { %v1546_v9 = vsel %vm1544_vm2, %v711_v23, %v3413_v7  ;;  %v1121_v20 = vsel %vm1119_vm5, %v3638_v47, %v1120_v19  ;;  %v1124_v49 = vsel %vm1122_vm7, %v1123_v60, %v3642_v14  ;;  %vm1645_vm0 = vcmp.eq.s32.totalorder %v1643_v22, 0 }
 0x13f   :  { %v1309_v18 = vor.u32 4788187, %v1308_v38  ;;  %v1312_v40 = vcvt.s32.f32 %v1305_v16  ;;  %v1316_v37 = vsub.s32 4, %v3538_v57  ;;  %v2592_v3 = vmov 269488144  }
 0x140   :  { %v2191_v11 = vunpack.c.l.s4 %v2592_v3  ;;  %v3686_v7 = vand.u32 3, %v3634_v30  ;;  %v3689_v23 = vmul.f32 %v714_v27, %v2931_v45  ;;  %v3692_v39 = vmul.f32 %v817_v10, %v3008_v4 }
 0x141   :  { %vm1648_vm5 = vcmp.eq.s32.totalorder %v1643_v22, 2  ;;  %v1310_v25 = vand.u32 2147483647, %v1309_v18  ;;  %v1443_v13 = vsel %vm1436_vm8, %v1439_v54, %v1442_v48  ;;  %vm1644_vm7 = vcmp.lt.s32.totalorder %v1643_v22, 2 }
 0x142   :  { %v2192_v28 = vunpack.c.0.s8 %v2191_v11  ;;  %v1125_v58 = vsel %vm1118_vm12, %v1121_v20, %v1124_v49  ;;  %v1547_v56 = vsel %vm1540_vm11, %v1543_v8, %v1546_v9  ;;  %v1647_v27 = vsel %vm1645_vm0, %v3425_v55, %v811_v2 }
 0x143   :  { %v1747_v10 = vand.u32 3, %v1746_v52  ;;  %v1313_v31 = vmul.f32 %v1312_v40, %v1310_v25  ;;  %v1317_v42 = vsel %vm1232_vm6, %v1316_v37, %v3538_v57  ;;  %v1650_v54 = vsel %vm1648_vm5, %v814_v41, %v3457_v35  ;;  %v3941_v52 = vld [vmem:[#allocation10_spill] sm:$0xff]  ;;  %v2182_v41 = vld [vmem:[%s3869_s4 + $0x8] sm:$0xff] }
 0x144   :  { %v3710_v48 = vsub.s32 %v2192_v28, %v3939_v15  ;;  %vm1222_vm12 = vcmp.eq.s32.totalorder %v3686_v7, 0  ;;  %vm1225_vm4 = vcmp.eq.s32.totalorder %v3686_v7, 2  ;;  %v3716_v2 = vmul.f32 %v3619_v32, %v3940_v12  ;;  %v2181_v35 = vld [vmem:[%s3869_s4] sm:$0xff]  ;;  %v3942_v28 = vld [vmem:[#allocation11_spill] sm:$0xff]  ;;  %s2594_s4 = smov [#allocation5]  }
 0x145   :  { %v3720_v8 = vmul.f32 %v3625_v62, %v3941_v52  ;;  %v3724_v57 = vsel %vm601_vm13, nan, %v1443_v13  ;;  %v1850_v55 = vadd.s32 3, %v3527_v0  ;;  %v1314_v32 = vxor.u32 2147483648, %v1313_v31  ;;  %s2349_s29 = sshll.u32 %s2594_s4, 4  ;;  %s2350_s29 = int_to_ptr.vmem [resolvable:$true] %s2349_s29 }
 0x146   :  { %v3735_v16 = vsel %vm704_vm9, nan, %v1547_v56  ;;  %v1954_v62 = vadd.s32 3, %v3579_v1  ;;  %v2196_v34 = vrot.slane %v2189_v50, %v3710_v48  ;;  %v1126_v0 = vsel %vm1116_vm14, nan, %v1125_v58  ;;  %s2560_s30 = scalar_lea.vmem %s2350_s29, 256  ;;  %p2565_p1 = scmp.lt.s32.totalorder %s2350_s29, %s2350_s29 }
 0x147   :  { %v1319_v38 = vsel %vm3667_vm15, 0, %v1317_v42  ;;  %v1651_v9 = vsel %vm1644_vm7, %v1647_v27, %v1650_v54  ;;  %vm1749_vm13 = vcmp.eq.s32.totalorder %v1747_v10, 0  ;;  %vm1221_vm8 = vcmp.lt.s32.totalorder %v3686_v7, 2  ;;  %p2561_p0 = scmp.ne.s32.totalorder %s2350_s29, %s2560_s30  ;;  %p2566_p2 = scmp.lt.s32.totalorder %s2560_s30, %s2560_s30 }
 0x148   :  { %v1315_v59 = vsel %vm1232_vm6, %v1314_v32, %v1313_v31  ;;  %vm1752_vm9 = vcmp.eq.s32.totalorder %v1747_v10, 2  ;;  %v2198_v20 = vmul.f32 %v2196_v34, %v2181_v35  ;;  %v2199_v49 = vmul.f32 %v2196_v34, %v2182_v41 }
 0x149   :  { %v1318_v1 = vsel %vm3667_vm15, %v2920_v46, %v1315_v59  ;;  %v1851_v18 = vand.u32 3, %v1850_v55  ;;  %v2058_v40 = vadd.s32 3, %v3634_v30  ;;  %v2541_v37 = vpop.eup %2540  ;;  %v1955_v22 = vand.u32 3, %v1954_v62  ;;  %p2567_p3 = por %p2566_p2, %p2565_p1 }
 0x14a   :  { %2544 = vcosq.f32 %v1318_v1  ;;  %v3751_v3 = vmax.f32 %v2198_v20, 0.0  ;;  %v3753_v11 = vmax.f32 %v2199_v49, 0.0  ;;  %v2543_v25 = vpop.eup %2542  ;;  %v3755_v13 = vand.u32 3, %v1319_v38  ;;  %v3944_v20 = vld [vmem:[#allocation12_spill] sm:$0xff] }
 0x14b   :  { %2546 = vsinq.f32 %v1318_v1  ;;  %v3758_v50 = vmul.f32 %v1126_v0, %v3942_v28  ;;  %vm1748_vm6 = vcmp.lt.s32.totalorder %v1747_v10, 2  ;;  %v1751_v30 = vsel %vm1749_vm13, %v3481_v33, %v914_v61  ;;  %p2568_p4 = pnand %p2567_p3, %p2561_p0 }
 0x14c   :  { %v1754_v5 = vsel %vm1752_vm9, %v917_v17, %v3514_v24  ;;  %2548 = vrsqrt.f32 %v3751_v3  ;;  %v2593_v58 = vmov 1983009808   ;;  %vm1219_vm2 = vweird.f32 %v2904_v51 }
 0x14d   :  { %v2227_v56 = vunpack.c.l.s4 %v2593_v58  ;;  %vm1853_vm11 = vcmp.eq.s32.totalorder %v1851_v18, 0  ;;  %vm1856_vm15 = vcmp.eq.s32.totalorder %v1851_v18, 2  ;;  %v2059_v27 = vand.u32 3, %v2058_v40 }
 0x14e   :  { %2550 = vrsqrt.f32 %v3753_v11  ;;  %v1223_v31 = vxor.u32 2147483648, %v2543_v25  ;;  %v1226_v42 = vxor.u32 2147483648, %v2541_v37  ;;  %vm1957_vm0 = vcmp.eq.s32.totalorder %v1955_v22, 0 }
 0x14f   :  { %vm1960_vm5 = vcmp.eq.s32.totalorder %v1955_v22, 2  ;;  %v1652_v33 = vsel %vm807_vm1, nan, %v1651_v9  ;;  %v1755_v24 = vsel %vm1748_vm6, %v1751_v30, %v1754_v5  ;;  %vm1852_vm7 = vcmp.lt.s32.totalorder %v1851_v18, 2  ;;  %v2271_v30 = vpop.permute.xlu0 %2270 }
 0x150   :  { %v2162_v17 = vadd.s32 3, %v1319_v38  ;;  %v1224_v61 = vsel %vm1222_vm12, %v2541_v37, %v1223_v31  ;;  %v1227_v54 = vsel %vm1225_vm4, %v1226_v42, %v2543_v25  ;;  %v1855_v55 = vsel %vm1853_vm11, %v3519_v44, %v1017_v43 }
 0x151   :  { %v2228_v35 = vunpack.c.0.s8 %v2227_v56  ;;  %vm1324_vm13 = vcmp.lt.s32.totalorder %v3755_v13, 2  ;;  %v3943_v6 = vxor.u32 2147483648, %v3519_v44  ;;  %vm1956_vm1 = vcmp.lt.s32.totalorder %v1955_v22, 2 }
 0x152   :  { %v1959_v41 = vsel %vm1957_vm0, %v3638_v47, %v1120_v19  ;;  %v1962_v32 = vsel %vm1960_vm5, %v1123_v60, %v3642_v14  ;;  %vm1325_vm12 = vcmp.eq.s32.totalorder %v3755_v13, 0  ;;  %vm2064_vm4 = vcmp.eq.s32.totalorder %v2059_v27, 2 }
 0x153   :  { %v1858_v10 = vsel %vm1856_vm15, %v3943_v6, %v3540_v36  ;;  %v2224_v43 = vcombine.low %v3628_v63, %v3689_v23  ;;  %v2225_v44 = vcombine.low %v3692_v39, %v3716_v2  ;;  %v1228_v36 = vsel %vm1221_vm8, %v1224_v61, %v1227_v54 }
 0x154   :  { %vm1328_vm9 = vcmp.eq.s32.totalorder %v3755_v13, 2  ;;  %vm2061_vm6 = vcmp.eq.s32.totalorder %v2059_v27, 0  ;;  %v2163_v19 = vand.u32 3, %v2162_v17  ;;  %vm1322_vm11 = vweird.f32 %v2920_v46 }
 0x155   :  { %v1756_v47 = vsel %vm910_vm3, nan, %v1755_v24  ;;  %v1859_v14 = vsel %vm1852_vm7, %v1855_v55, %v1858_v10  ;;  %v1963_v60 = vsel %vm1956_vm1, %v1959_v41, %v1962_v32  ;;  %v3805_v63 = vsub.s32 %v2228_v35, %v3939_v15 }
 0x156   :  { %vm2060_vm15 = vcmp.lt.s32.totalorder %v2059_v27, 2  ;;  %v2066_v23 = vsel %vm2064_vm4, %v1226_v42, %v2543_v25  ;;  %v2173_v7 = vmul.f32 %v3724_v57, %v2925_v53  ;;  %v2174_v39 = vmul.f32 %v3735_v16, %v2931_v45  ;;  %v3945_v42 = vld [vmem:[#allocation13_spill] sm:$0xff] }
 0x157   :  { %v1229_v2 = vsel %vm1219_vm2, nan, %v1228_v36  ;;  %v2063_v62 = vsel %vm2061_vm6, %v2541_v37, %v1223_v31  ;;  %v2232_v26 = vrot.slane %v2224_v43, %v3805_v63  ;;  %v2239_v34 = vrot.slane %v2225_v44, %v3805_v63  ;;  %v2545_v0 = vpop.eup %2544 }
 0x158   :  { %v1860_v15 = vsel %vm1013_vm10, nan, %v1859_v14  ;;  %v1964_v38 = vsel %vm1116_vm14, nan, %v1963_v60  ;;  %vm2164_vm3 = vcmp.lt.s32.totalorder %v2163_v19, 2  ;;  %vm2168_vm8 = vcmp.eq.s32.totalorder %v2163_v19, 2  ;;  %v2547_v53 = vpop.eup %2546 }
 0x159   :  { %v1329_v57 = vxor.u32 2147483648, %v2545_v0  ;;  %vm2165_vm0 = vcmp.eq.s32.totalorder %v2163_v19, 0  ;;  %v2175_v45 = vmul.f32 %v1652_v33, %v3008_v4  ;;  %v2176_v16 = vmul.f32 %v1756_v47, %v3940_v12  ;;  %v2549_v9 = vpop.eup %2548 }
 0x15a   :  { %v1326_v59 = vxor.u32 2147483648, %v2547_v53  ;;  %v1339_v49 = vmul.f32 %v1229_v2, %v3944_v20  ;;  %v2067_v1 = vsel %vm2060_vm15, %v2063_v62, %v2066_v23  ;;  %v2241_v29 = vcombine.low %v3720_v8, %v3758_v50 }
 0x15b   :  { %v2551_v21 = vpop.eup %2550  ;;  %v1330_v18 = vsel %vm1328_vm9, %v1329_v57, %v2547_v53  ;;  %v2170_v40 = vsel %vm2168_vm8, %v1329_v57, %v2547_v53  ;;  %v2203_v37 = vmul.f32 %v2549_v9, %v3751_v3  ;;  %v2240_v22 = vcombine.low %v2232_v26, %v2239_v34 }
 0x15c   :  { %v1327_v4 = vsel %vm1325_vm12, %v2545_v0, %v1326_v59  ;;  %v2167_v12 = vsel %vm2165_vm0, %v2545_v0, %v1326_v59  ;;  %vm2204_vm10 = vcmp.eq.f32.partialorder %v3751_v3, inf  ;;  %v2207_v25 = vand.u32 2147483648, %v3751_v3 }
 0x15d   :  { %v1331_v8 = vsel %vm1324_vm13, %v1327_v4, %v1330_v18  ;;  %v2205_v50 = vsel %vm2204_vm10, %v3751_v3, %v2203_v37  ;;  %vm2206_vm14 = vcmp.eq.f32.partialorder %v3751_v3, 0.0  ;;  %v2210_v5 = vmul.f32 %v2551_v21, %v3753_v11 }
 0x15e   :  { %v1332_v58 = vsel %vm1322_vm11, nan, %v1331_v8  ;;  %v2171_v56 = vsel %vm2164_vm3, %v2167_v12, %v2170_v40  ;;  %v2208_v27 = vsel %vm2206_vm14, %v2207_v25, %v2205_v50  ;;  %v2273_v31 = vmul.f32 %v2271_v30, %v2173_v7 }
 0x15f   :  { %v1340_v33 = vmul.f32 %v1332_v58, %v3945_v42  ;;  %v2260_v24 = vmul.f32 %v2240_v22, %v2208_v27  ;;  %v2274_v17 = vmul.f32 %v2271_v30, %v2174_v39  ;;  %v2275_v61 = vmul.f32 %v2271_v30, %v2175_v45 }
 0x160   :  { %v2068_v13 = vsel %vm1219_vm2, nan, %v2067_v1  ;;  %vm2211_vm5 = vcmp.eq.f32.partialorder %v3753_v11, inf  ;;  %v2249_v54 = vrot.slane %v2241_v29, %v3805_v63  ;;  %v2276_v55 = vmul.f32 %v2271_v30, %v2176_v16 }
 0x161   :  { %v2172_v35 = vsel %vm1322_vm11, nan, %v2171_v56  ;;  %v2212_v6 = vsel %vm2211_vm5, %v3753_v11, %v2210_v5  ;;  %v2242_v10 = vcombine.low %v1339_v49, %v1340_v33  ;;  %v2262_v41 = vadd.f32 %v2260_v24, %v3751_v3 }
 0x162   :  { %v2177_v32 = vmul.f32 %v1860_v15, %v3941_v52  ;;  %v2178_v43 = vmul.f32 %v1964_v38, %v3942_v28  ;;  %v2214_v51 = vand.u32 2147483648, %v3753_v11  ;;  %v2179_v44 = vmul.f32 %v2068_v13, %v3944_v20  ;;  %v2330_v38 = vpop.permute.xlu1 %2329 }
 0x163   :  { %vm2213_vm2 = vcmp.eq.f32.partialorder %v3753_v11, 0.0  ;;  %v2256_v36 = vrot.slane %v2242_v10, %v3805_v63  ;;  %v2457_v19 = vcvt.f32.s32 %v2262_v41  ;;  %v2180_v46 = vmul.f32 %v2172_v35, %v3945_v42 }
 0x164   :  { %v2215_v47 = vsel %vm2213_vm2, %v2214_v51, %v2212_v6  ;;  %v2289_v14 = vcombine.low %v2273_v31, %v2274_v17  ;;  %v2290_v60 = vcombine.low %v2275_v61, %v2276_v55  ;;  %v2455_v7 = vand.u32 2147483647, %v2262_v41 }
 0x165   :  { %v2257_v23 = vcombine.low %v2249_v54, %v2256_v36  ;;  %v2458_v3 = vcvt.s32.f32 %v2457_v19  ;;  %v2277_v52 = vmul.f32 %v2271_v30, %v2177_v32  ;;  %v2460_v2 = vand.u32 2147483648, %v2262_v41 }
 0x166   :  { %v2278_v62 = vmul.f32 %v2271_v30, %v2178_v43  ;;  %v2279_v26 = vmul.f32 %v2271_v30, %v2179_v44  ;;  %v2280_v34 = vmul.f32 %v2271_v30, %v2180_v46  ;;  %v2297_v0 = vrot.slane %v2289_v14, %v3805_v63 }
 0x167   :  { %v2261_v39 = vmul.f32 %v2257_v23, %v2215_v47  ;;  %v2459_v28 = vand.u32 2147483647, %v2458_v3  ;;  %v2304_v15 = vrot.slane %v2290_v60, %v3805_v63  ;;  %vm2456_vm7 = vcmp.lt.f32.partialorder %v2455_v7, 8388608.0 }
 0x168   :  { %v2306_v9 = vcombine.low %v2277_v52, %v2278_v62  ;;  %v2307_v49 = vcombine.low %v2279_v26, %v2280_v34  ;;  %v2337_v1 = vrot.slane %v2330_v38, %v3710_v48 }
 0x169   :  { %v2263_v53 = vadd.f32 %v2261_v39, %v3753_v11  ;;  %v2461_v57 = vor.u32 %v2460_v2, %v2459_v28  ;;  %v2305_v20 = vcombine.low %v2297_v0, %v2304_v15 }
 0x16a   :  { %v2314_v22 = vrot.slane %v2306_v9, %v3805_v63  ;;  %v2321_v4 = vrot.slane %v2307_v49, %v3805_v63 }
 0x16b   :  { %v2462_v45 = vsel %vm2456_vm7, %v2461_v57, %v2262_v41  ;;  %v2465_v16 = vcvt.f32.s32 %v2263_v53  ;;  %v2463_v21 = vand.u32 2147483647, %v2263_v53  ;;  %v2468_v37 = vand.u32 2147483648, %v2263_v53 }
 0x16c   :  { %v2266_v59 = vmax.f32 %v2462_v45, 0.0  ;;  %v2322_v8 = vcombine.low %v2314_v22, %v2321_v4 }
 0x16d   :  { %v2466_v29 = vcvt.s32.f32 %v2465_v16  ;;  %vm2464_vm13 = vcmp.lt.f32.partialorder %v2463_v21, 8388608.0 }
 0x16e   :  { %v2325_v18 = vadd.f32 %v2305_v20, %v2266_v59 }
 0x16f   :  { %v2467_v40 = vand.u32 2147483647, %v2466_v29 }
 0x170   :  { %v2339_v11 = vadd.f32 %v2337_v1, %v2325_v18 }
 0x171   :  { %v2469_v12 = vor.u32 %v2468_v37, %v2467_v40 }
 0x172   :  { %2341 = vst [vmem:[#allocation5] sm:$0xff] %v2339_v11 }
 0x173   :  { %v2470_v25 = vsel %vm2464_vm13, %v2469_v12, %v2263_v53 }
 0x174   :  { %v2267_v30 = vmax.f32 %v2470_v25, 0.0 }
 0x176   :  { %v2326_v50 = vadd.f32 %v2322_v8, %v2267_v30 }
 0x178   :  { %v2340_v48 = vadd.f32 %v2337_v1, %v2326_v50 }
 0x17a   :  { %2342 = vst [vmem:[#allocation5 + $0x8] sm:$0xff] %v2340_v48 }
 0x17b   :  { %2571 = shalt.err (!%p2568_p4)
}
 0x17c   :  { %2352 = dma.vmem_to_hbm [thread:$0]  %s2350_s29, 256, %s3870_s5, [#allocation3]  }
 0x17d   :  { %2582 = dma.done.wait [#allocation3], 256  }
 0x17e   :  { %2583 = vsyncadd [#allocation3], 4294967040 }
 0x17f   :  { %2356 = vsyncpa [#allocation3], 1 }
 0x180   :  { %2357 = vsyncpa [#allocation4], 1 }

</bundles_post_ra>
